<compile_context>
chip_gen: v7x
topology: tpu7x:2x2x1
jax: 0.10.0
libtpu: 0.0.40
codegen_flags: <defaults>
</compile_context>

<pallas_src>
import functools

import jax
import jax.numpy as jnp
from jax import lax
from jax.experimental import pallas as pl
from jax.experimental.pallas import tpu as pltpu

LANE = 128
SUBLANE = 8


def _round_up(x, m):
    return (x + m - 1) // m * m


def _vmem_limits():
    """(vmem_limit_bytes, row-tile budget) adapted to the TPU generation."""
    try:
        cap = int(pltpu.get_tpu_info().vmem_capacity_bytes)
    except Exception:
        cap = 64 * 1024 * 1024          # conservative (v7x-sized) fallback
    limit = min((cap * 3) // 4, 100 * 1024 * 1024)
    return limit, limit // 2


def _pick_tm(m, row_bytes, resident_bytes=0):
    """Largest power-of-two row tile whose double-buffered blocks fit the budget."""
    _, budget = _vmem_limits()
    budget = max(budget - 2 * resident_bytes, 1 << 20)
    tm = 1024
    while tm > 8 and (2 * tm * row_bytes > budget or tm > m):
        tm //= 2
    # Keep >=2 grid steps when tiles are large (pipelining / 2-TC megacore).
    if tm >= 512 and -(-m // tm) < 2:
        tm //= 2
    return max(tm, 8)


# ----------------------------- Pallas kernels ------------------------------ #

def _conv1_kernel(x_ref, w_ref, b_ref, o_ref):
    """out = relu(x @ w + b), f32 accumulation."""
    acc = jnp.dot(x_ref[...], w_ref[...], preferred_element_type=jnp.float32)
    o_ref[...] = jnp.maximum(acc + b_ref[...], 0.0).astype(o_ref.dtype)


def conv1x1_bn_relu(x2d, w, b):
    m, k = x2d.shape
    n = w.shape[1]
    row_bytes = 2 * (k + n)
    resident = w.size * 2 + b.size * 4
    tm = _pick_tm(m, row_bytes, resident)
    m_pad = _round_up(m, tm)
    if m_pad != m:
        x2d = jnp.pad(x2d, ((0, m_pad - m), (0, 0)))
    limit, _ = _vmem_limits()
    out = pl.pallas_call(
        _conv1_kernel,
        out_shape=jax.ShapeDtypeStruct((m_pad, n), jnp.bfloat16),
        grid=(m_pad // tm,),
        in_specs=[
            pl.BlockSpec((tm, k), lambda i: (i, 0)),     # activations: tiled rows
            pl.BlockSpec((k, n), lambda i: (0, 0)),      # weight (grid-invariant)
            pl.BlockSpec((1, n), lambda i: (0, 0)),      # folded-BN bias
        ],
        out_specs=pl.BlockSpec((tm, n), lambda i: (i, 0)),
        compiler_params=pltpu.CompilerParams(
            dimension_semantics=("parallel",), vmem_limit_bytes=limit),
    )(x2d, w, b)
    return out[:m]


def _conv3x3_kernel(xps_ref, w_ref, b_ref, o_ref, acc_ref, *,
                    stride, hb, w_acc, wout):
    """3x3 conv + BN + ReLU on one H-band of one image.

    xps_ref: (s*s, h_alloc, w_alloc, C) bf16 stride-phases of the padded input.
    w_ref:   (9, C, C) bf16 per-tap matrices (BN scale folded).
    b_ref:   (1, C) f32 folded-BN bias.
    o_ref:   (hb, wout, C) bf16 output band.
    acc_ref: (hb * w_acc, C) f32 accumulator scratch.
    """
    band = pl.program_id(1)
    row0 = band * hb
    c = w_ref.shape[-1]
    t = 0
    for dy in range(3):
        for dx in range(3):
            ph = (dy % stride) * stride + (dx % stride)   # static phase index
            x = xps_ref[ph,
                        pl.ds(row0 + dy // stride, hb),
                        pl.ds(dx // stride, w_acc), :]     # (hb, w_acc, C)
            x = x.reshape(hb * w_acc, c)                   # free: w_acc % 8 == 0
            contrib = jnp.dot(x, w_ref[dy * 3 + dx],
                              preferred_element_type=jnp.float32)
            if t == 0:
                acc_ref[...] = contrib
            else:
                acc_ref[...] += contrib
            t += 1
    out = jnp.maximum(acc_ref[...] + b_ref[...], 0.0)
    o_ref[...] = out.reshape(hb, w_acc, c)[:, :wout, :].astype(o_ref.dtype)


def conv3x3_bn_relu(out1_nhwc, w2, b2, stride, hout, wout):
    """conv2 (3x3, stride, pad=1) + BN + ReLU; stride handled in-kernel via
    a stride-phase split of the (halo-padded) input."""
    n, h, w, c = out1_nhwc.shape
    s = stride
    w_acc = _round_up(wout, SUBLANE)        # accumulator width (lane-dense reshape)
    h_alloc = hout + 2 // s                 # rows any tap can reach
    w_alloc = w_acc + 2 // s                # cols any tap can reach

    # One layout pass: halo pad, then split into the s*s stride phases so every
    # tap in the kernel is a contiguous (stride-free) window read.
    xp = jnp.pad(out1_nhwc, ((0, 0), (1, 1), (1, 1), (0, 0)))
    phases = []
    for ry in range(s):
        for rx in range(s):
            ph = xp[:, ry::s, rx::s, :]
            ph = ph[:, :h_alloc, :w_alloc, :]
            ph = jnp.pad(ph, ((0, 0), (0, h_alloc - ph.shape[1]),
                              (0, w_alloc - ph.shape[2]), (0, 0)))
            phases.append(ph)
    xps = jnp.stack(phases, axis=1).reshape(n * s * s, h_alloc, w_alloc, c)

    # H-band size: target >= 256 matmul rows per tap; keep hout % hb == 0 so no
    # post-kernel row slice is required.
    hb = min(hout, max(1, 256 // w_acc))
    while hout % hb:
        hb -= 1
    n_bands = hout // hb

    limit, _ = _vmem_limits()
    out = pl.pallas_call(
        functools.partial(_conv3x3_kernel, stride=s, hb=hb, w_acc=w_acc, wout=wout),
        out_shape=jax.ShapeDtypeStruct((n, hout, wout, c), jnp.bfloat16),
        grid=(n, n_bands),
        in_specs=[
            # whole-image phase stack; same block across bands => not re-DMAed
            pl.BlockSpec((s * s, h_alloc, w_alloc, c), lambda i, b: (i, 0, 0, 0)),
            pl.BlockSpec((9, c, c), lambda i, b: (0, 0, 0)),
            pl.BlockSpec((1, c), lambda i, b: (0, 0)),
        ],
        out_specs=pl.BlockSpec((None, hb, wout, c), lambda i, b: (i, b, 0, 0)),
        scratch_shapes=[pltpu.VMEM((hb * w_acc, c), jnp.float32)],
        compiler_params=pltpu.CompilerParams(
            dimension_semantics=("parallel", "parallel"), vmem_limit_bytes=limit),
    )(xps, w2, b2)
    return out


def _conv3_ds_res_kernel(a_ref, x_ref, w3_ref, wd_ref, b_ref, o_ref):
    """out = relu(a @ w3 + x @ wd + b), f32 accumulation (b = bn3.b + bnd.b)."""
    acc = jnp.dot(a_ref[...], w3_ref[...], preferred_element_type=jnp.float32)
    acc += jnp.dot(x_ref[...], wd_ref[...], preferred_element_type=jnp.float32)
    o_ref[...] = jnp.maximum(acc + b_ref[...], 0.0).astype(o_ref.dtype)


def conv3_downsample_residual(a2d, x2d, w3, wd, b):
    m, k3 = a2d.shape
    kd = x2d.shape[1]
    n = w3.shape[1]
    row_bytes = 2 * (k3 + kd + n)
    resident = (w3.size + wd.size) * 2 + b.size * 4
    tm = _pick_tm(m, row_bytes, resident)
    m_pad = _round_up(m, tm)
    if m_pad != m:
        a2d = jnp.pad(a2d, ((0, m_pad - m), (0, 0)))
        x2d = jnp.pad(x2d, ((0, m_pad - m), (0, 0)))
    limit, _ = _vmem_limits()
    out = pl.pallas_call(
        _conv3_ds_res_kernel,
        out_shape=jax.ShapeDtypeStruct((m_pad, n), jnp.bfloat16),
        grid=(m_pad // tm,),
        in_specs=[
            pl.BlockSpec((tm, k3), lambda i: (i, 0)),   # conv2 output rows
            pl.BlockSpec((tm, kd), lambda i: (i, 0)),   # subsampled input rows
            pl.BlockSpec((k3, n), lambda i: (0, 0)),    # conv3 weight
            pl.BlockSpec((kd, n), lambda i: (0, 0)),    # downsample weight
            pl.BlockSpec((1, n), lambda i: (0, 0)),     # fused bias (bn3 + bnd)
        ],
        out_specs=pl.BlockSpec((tm, n), lambda i: (i, 0)),
        compiler_params=pltpu.CompilerParams(
            dimension_semantics=("parallel",), vmem_limit_bytes=limit),
    )(a2d, x2d, w3, wd, b)
    return out[:m]


# --------------------------- parameter utilities --------------------------- #

def _fold_bn(gamma, beta, mean, var, eps=1e-5):
    scale = gamma / jnp.sqrt(var + eps)
    return scale, beta - mean * scale


def _pad_to(a, axis, size):
    pad = [(0, 0)] * a.ndim
    pad[axis] = (0, size - a.shape[axis])
    return jnp.pad(a, pad)


def init_params(key, inplanes, planes):
    """Deterministic synthetic parameters matching Bottleneck.__init__ shapes."""
    p2 = planes * 2
    ks = jax.random.split(key, 16)

    def conv_w(k, cout, cin, kh, kw):
        return 0.1 * jax.random.normal(k, (cout, cin, kh, kw), jnp.float32)

    def bn(k, c):
        k1, k2, k3, k4 = jax.random.split(k, 4)
        gamma = jax.random.uniform(k1, (c,), jnp.float32, 0.5, 1.5)
        beta = 0.1 * jax.random.normal(k2, (c,), jnp.float32)
        mean = 0.1 * jax.random.normal(k3, (c,), jnp.float32)
        var = jax.random.uniform(k4, (c,), jnp.float32, 0.5, 1.5)
        return gamma, beta, mean, var

    return dict(
        w1=conv_w(ks[0], planes, inplanes, 1, 1), bn1=bn(ks[1], planes),
        w2=conv_w(ks[2], planes, planes, 3, 3), bn2=bn(ks[3], planes),
        w3=conv_w(ks[4], p2, planes, 1, 1), bn3=bn(ks[5], p2),
        wd=conv_w(ks[6], p2, inplanes, 1, 1), bnd=bn(ks[7], p2),
    )


# ----------------------------- forward (Pallas) ---------------------------- #

@functools.partial(jax.jit, static_argnames=("stride",))
def bottleneck_forward(params, x_nchw, stride):
    s = stride
    x = jnp.transpose(x_nchw, (0, 2, 3, 1))             # NCHW -> NHWC
    n, h, w, cin = x.shape
    p = params["w1"].shape[0]
    p2 = params["w3"].shape[0]
    hout = (h + 2 - 3) // s + 1
    wout = (w + 2 - 3) // s + 1

    # Contraction dim padded only to the sublane (8); output channels to 128.
    cin_p = _round_up(cin, SUBLANE)
    p_p = _round_up(p, LANE)
    p2_p = _round_up(p2, LANE)

    s1, b1 = _fold_bn(*params["bn1"])
    s2, b2 = _fold_bn(*params["bn2"])
    s3, b3 = _fold_bn(*params["bn3"])
    sd, bd = _fold_bn(*params["bnd"])

    # 1x1 weights -> (Cin, Cout) with the BN scale folded in, zero-padded, bf16.
    def prep_1x1(w_oihw, scale, k_pad, n_pad):
        wm = jnp.transpose(w_oihw[:, :, 0, 0], (1, 0)) * scale[None, :]
        return _pad_to(_pad_to(wm, 1, n_pad), 0, k_pad).astype(jnp.bfloat16)

    w1m = prep_1x1(params["w1"], s1, cin_p, p_p)
    w3m = prep_1x1(params["w3"], s3, p_p, p2_p)
    wdm = prep_1x1(params["wd"], sd, cin_p, p2_p)

    # 3x3 weight -> (9, Cin, Cout) per-tap matrices, scale folded, padded, bf16.
    w2m = jnp.transpose(params["w2"], (2, 3, 1, 0)).reshape(9, p, p) * s2[None, None, :]
    w2m = _pad_to(_pad_to(w2m, 2, p_p), 1, p_p).astype(jnp.bfloat16)

    b1p = _pad_to(b1, 0, p_p).reshape(1, p_p).astype(jnp.float32)
    b2p = _pad_to(b2, 0, p_p).reshape(1, p_p).astype(jnp.float32)
    b3dp = _pad_to(b3 + bd, 0, p2_p).reshape(1, p2_p).astype(jnp.float32)  # fused bias

    x_nhwc = _pad_to(x, 3, cin_p).astype(jnp.bfloat16)

    # --- K1: conv1 (1x1) + bn1 + relu --------------------------------------
    out1 = conv1x1_bn_relu(x_nhwc.reshape(-1, cin_p), w1m, b1p)
    out1 = out1.reshape(n, h, w, p_p)

    # --- K2: conv2 (3x3, stride, pad=1) + bn2 + relu ------------------------
    out2 = conv3x3_bn_relu(out1, w2m, b2p, s, hout, wout)      # (n, hout, wout, p_p)

    # --- K3: conv3 (1x1)+bn3 fused with downsample (1x1 stride)+bnd,
    #         residual add and final relu.  Downsample is computed directly at
    #         output resolution from the subsampled input rows.
    x_sub = x_nhwc if s == 1 else x_nhwc[:, ::s, ::s, :]
    out = conv3_downsample_residual(out2.reshape(-1, p_p),
                                    x_sub.reshape(-1, cin_p),
                                    w3m, wdm, b3dp)            # (n*hout*wout, p2_p) bf16
    out = out[:, :p2].reshape(n, hout, wout, p2)
    return jnp.transpose(out, (0, 3, 1, 2)).astype(jnp.float32)  # NHWC -> NCHW


# ----------------------------- pure-JAX reference --------------------------- #

def _conv_ref(x_nhwc, w_oihw, stride, padding):
    return lax.conv_general_dilated(
        x_nhwc, jnp.transpose(w_oihw, (2, 3, 1, 0)),
        (stride, stride), padding,
        dimension_numbers=("NHWC", "HWIO", "NHWC"))


def bottleneck_ref(params, x_nchw, stride):
    x = jnp.transpose(x_nchw, (0, 2, 3, 1))
    s1, b1 = _fold_bn(*params["bn1"])
    s2, b2 = _fold_bn(*params["bn2"])
    s3, b3 = _fold_bn(*params["bn3"])
    sd, bd = _fold_bn(*params["bnd"])

    out = jnp.maximum(_conv_ref(x, params["w1"], 1, "VALID") * s1 + b1, 0.0)
    out = jnp.maximum(
        _conv_ref(out, params["w2"], stride, [(1, 1), (1, 1)]) * s2 + b2, 0.0)
    out = _conv_ref(out, params["w3"], 1, "VALID") * s3 + b3
    res = _conv_ref(x, params["wd"], stride, "VALID") * sd + bd
    out = jnp.maximum(out + res, 0.0)
    return jnp.transpose(out, (0, 3, 1, 2))


# ----------------------------------- main ----------------------------------- #

if __name__ == "__main__":
    key = jax.random.PRNGKey(0)
    k_x, k_p = jax.random.split(key)

    batch, inplanes, planes, spatial = 2, 4, 4, 16
    x = jax.random.normal(k_x, (batch, inplanes, spatial, spatial), jnp.float32)
    params = init_params(k_p, inplanes, planes)

    for stride in (2, 1):
        out = jax.block_until_ready(bottleneck_forward(params, x, stride=stride))
        ref = jax.block_until_ready(bottleneck_ref(params, x, stride))
        assert out.shape == ref.shape == (batch, planes * 2,
                                          spatial // stride, spatial // stride)
        # bf16 activations/weights (f32 accumulation) => looser tolerance than f32.
        max_err = float(jnp.max(jnp.abs(out - ref)))
        assert jnp.allclose(out, ref, atol=3e-2, rtol=3e-2), (
            f"stride={stride}: mismatch vs reference, max abs err = {max_err}")

    print("KERNEL_OK")
</pallas_src>

<mosaic_0001>
module attributes {stable_mosaic.version = 11 : i64} {
  func.func @_conv1_kernel(%arg0: i32, %arg1: memref<256x8xbf16, #tpu.memory_space<vmem>>, %arg2: memref<8x128xbf16, #tpu.memory_space<vmem>>, %arg3: memref<1x128xf32, #tpu.memory_space<vmem>>, %arg4: memref<256x128xbf16, #tpu.memory_space<vmem>>) attributes {dimension_semantics = [#tpu.dimension_semantics<parallel>], iteration_bounds = array<i64: 2>, scalar_prefetch = 0 : i64, scratch_operands = 0 : i64, tpu.core_type = #tpu.core_type<tc>, window_params = [{transform_indices = @transform_0, window_bounds = array<i64: 256, 8>}, {pipeline_mode = #tpu.pipeline_mode<synchronous>, transform_indices = @transform_1, window_bounds = array<i64: 8, 128>}, {pipeline_mode = #tpu.pipeline_mode<synchronous>, transform_indices = @transform_2, window_bounds = array<i64: 1, 128>}, {transform_indices = @transform_3, window_bounds = array<i64: 256, 128>}]} {
    %c0 = arith.constant 0 : index
    %c0_0 = arith.constant 0 : index
    %0 = vector.load %arg1[%c0, %c0_0] : memref<256x8xbf16, #tpu.memory_space<vmem>>, vector<256x8xbf16>
    %c0_1 = arith.constant 0 : index
    %c0_2 = arith.constant 0 : index
    %1 = vector.load %arg2[%c0_1, %c0_2] : memref<8x128xbf16, #tpu.memory_space<vmem>>, vector<8x128xbf16>
    %cst = arith.constant dense<0.000000e+00> : vector<256x128xf32>
    %2 = tpu.matmul %0, %1, %cst {dimension_numbers = #tpu.dot_dimension_numbers<[1], [0], [0], [1], [0, 0, 1, 1], [], []>} : vector<256x8xbf16>, vector<8x128xbf16>, vector<256x128xf32> -> vector<256x128xf32>
    %c0_3 = arith.constant 0 : index
    %c0_4 = arith.constant 0 : index
    %3 = vector.load %arg3[%c0_3, %c0_4] : memref<1x128xf32, #tpu.memory_space<vmem>>, vector<1x128xf32>
    %4 = vector.broadcast %3 : vector<1x128xf32> to vector<256x128xf32>
    %5 = arith.addf %2, %4 : vector<256x128xf32>
    %cst_5 = arith.constant 0.000000e+00 : f32
    %6 = vector.broadcast %cst_5 : f32 to vector<256x128xf32>
    %7 = arith.maximumf %5, %6 : vector<256x128xf32>
    %8 = arith.truncf %7 : vector<256x128xf32> to vector<256x128xbf16>
    %c0_6 = arith.constant 0 : index
    %c0_7 = arith.constant 0 : index
    %9 = vector.load %arg4[%c0_6, %c0_7] : memref<256x128xbf16, #tpu.memory_space<vmem>>, vector<256x128xbf16>
    tpu.vector_store %arg4[%c0_6, %c0_7], %8 {strides = array<i32>} : memref<256x128xbf16, #tpu.memory_space<vmem>>, vector<256x128xbf16>,
    return
  }
  func.func @transform_0(%arg0: i32) -> (i32, i32) {
    %c0_i32 = arith.constant 0 : i32
    %c0_i32_0 = arith.constant 0 : i32
    return %arg0, %c0_i32 : i32, i32
  }
  func.func @transform_1(%arg0: i32) -> (i32, i32) {
    %c0_i32 = arith.constant 0 : i32
    %c0_i32_0 = arith.constant 0 : i32
    %c0_i32_1 = arith.constant 0 : i32
    return %c0_i32, %c0_i32_0 : i32, i32
  }
  func.func @transform_2(%arg0: i32) -> (i32, i32) {
    %c0_i32 = arith.constant 0 : i32
    %c0_i32_0 = arith.constant 0 : i32
    %c0_i32_1 = arith.constant 0 : i32
    return %c0_i32, %c0_i32_0 : i32, i32
  }
  func.func @transform_3(%arg0: i32) -> (i32, i32) {
    %c0_i32 = arith.constant 0 : i32
    %c0_i32_0 = arith.constant 0 : i32
    return %arg0, %c0_i32 : i32, i32
  }
}

module attributes {stable_mosaic.version = 11 : i64} {
  func.func @_conv3x3_kernel(%arg0: i32, %arg1: i32, %arg2: memref<4x9x9x128xbf16, #tpu.memory_space<vmem>>, %arg3: memref<9x128x128xbf16, #tpu.memory_space<vmem>>, %arg4: memref<1x128xf32, #tpu.memory_space<vmem>>, %arg5: memref<1x8x8x128xbf16, #tpu.memory_space<vmem>>, %arg6: memref<64x128xf32, #tpu.memory_space<vmem>>) attributes {dimension_semantics = [#tpu.dimension_semantics<parallel>, #tpu.dimension_semantics<parallel>], iteration_bounds = array<i64: 2, 1>, scalar_prefetch = 0 : i64, scratch_operands = 1 : i64, tpu.core_type = #tpu.core_type<tc>, window_params = [{transform_indices = @transform_0, window_bounds = array<i64: 4, 9, 9, 128>}, {pipeline_mode = #tpu.pipeline_mode<synchronous>, transform_indices = @transform_1, window_bounds = array<i64: 9, 128, 128>}, {pipeline_mode = #tpu.pipeline_mode<synchronous>, transform_indices = @transform_2, window_bounds = array<i64: 1, 128>}, {transform_indices = @transform_3, window_bounds = array<i64: 1, 8, 8, 128>}]} {
    %c8_i32 = arith.constant 8 : i32
    %0 = arith.muli %arg1, %c8_i32 : i32
    %c0_i32 = arith.constant 0 : i32
    %1 = arith.addi %0, %c0_i32 : i32
    %c0 = arith.constant 0 : index
    %2 = arith.index_cast %1 : i32 to index
    %c0_0 = arith.constant 0 : index
    %c0_1 = arith.constant 0 : index
    %3 = vector.load %arg2[%c0, %2, %c0_0, %c0_1] : memref<4x9x9x128xbf16, #tpu.memory_space<vmem>>, vector<1x8x8x128xbf16>
    %4 = vector.shape_cast %3 : vector<1x8x8x128xbf16> to vector<8x8x128xbf16>
    %5 = vector.shape_cast %4 : vector<8x8x128xbf16> to vector<64x128xbf16>
    %c0_2 = arith.constant 0 : index
    %c0_3 = arith.constant 0 : index
    %c0_4 = arith.constant 0 : index
    %6 = vector.load %arg3[%c0_2, %c0_3, %c0_4] : memref<9x128x128xbf16, #tpu.memory_space<vmem>>, vector<1x128x128xbf16>
    %7 = vector.shape_cast %6 : vector<1x128x128xbf16> to vector<128x128xbf16>
    %cst = arith.constant dense<0.000000e+00> : vector<64x128xf32>
    %8 = tpu.matmul %5, %7, %cst {dimension_numbers = #tpu.dot_dimension_numbers<[1], [0], [0], [1], [0, 0, 1, 1], [], []>} : vector<64x128xbf16>, vector<128x128xbf16>, vector<64x128xf32> -> vector<64x128xf32>
    %c0_5 = arith.constant 0 : index
    %c0_6 = arith.constant 0 : index
    %9 = vector.load %arg6[%c0_5, %c0_6] : memref<64x128xf32, #tpu.memory_space<vmem>>, vector<64x128xf32>
    tpu.vector_store %arg6[%c0_5, %c0_6], %8 {strides = array<i32>} : memref<64x128xf32, #tpu.memory_space<vmem>>, vector<64x128xf32>,
    %c0_i32_7 = arith.constant 0 : i32
    %10 = arith.addi %0, %c0_i32_7 : i32
    %c1 = arith.constant 1 : index
    %11 = arith.index_cast %10 : i32 to index
    %c0_8 = arith.constant 0 : index
    %c0_9 = arith.constant 0 : index
    %12 = vector.load %arg2[%c1, %11, %c0_8, %c0_9] : memref<4x9x9x128xbf16, #tpu.memory_space<vmem>>, vector<1x8x8x128xbf16>
    %13 = vector.shape_cast %12 : vector<1x8x8x128xbf16> to vector<8x8x128xbf16>
    %14 = vector.shape_cast %13 : vector<8x8x128xbf16> to vector<64x128xbf16>
    %c1_10 = arith.constant 1 : index
    %c0_11 = arith.constant 0 : index
    %c0_12 = arith.constant 0 : index
    %15 = vector.load %arg3[%c1_10, %c0_11, %c0_12] : memref<9x128x128xbf16, #tpu.memory_space<vmem>>, vector<1x128x128xbf16>
    %16 = vector.shape_cast %15 : vector<1x128x128xbf16> to vector<128x128xbf16>
    %cst_13 = arith.constant dense<0.000000e+00> : vector<64x128xf32>
    %17 = tpu.matmul %14, %16, %cst_13 {dimension_numbers = #tpu.dot_dimension_numbers<[1], [0], [0], [1], [0, 0, 1, 1], [], []>} : vector<64x128xbf16>, vector<128x128xbf16>, vector<64x128xf32> -> vector<64x128xf32>
    %c0_14 = arith.constant 0 : index
    %c0_15 = arith.constant 0 : index
    %18 = vector.load %arg6[%c0_14, %c0_15] : memref<64x128xf32, #tpu.memory_space<vmem>>, vector<64x128xf32>
    %19 = arith.addf %18, %17 : vector<64x128xf32>
    %c0_16 = arith.constant 0 : index
    %c0_17 = arith.constant 0 : index
    %20 = vector.load %arg6[%c0_16, %c0_17] : memref<64x128xf32, #tpu.memory_space<vmem>>, vector<64x128xf32>
    tpu.vector_store %arg6[%c0_16, %c0_17], %19 {strides = array<i32>} : memref<64x128xf32, #tpu.memory_space<vmem>>, vector<64x128xf32>,
    %c0_i32_18 = arith.constant 0 : i32
    %21 = arith.addi %0, %c0_i32_18 : i32
    %c0_19 = arith.constant 0 : index
    %22 = arith.index_cast %21 : i32 to index
    %c1_20 = arith.constant 1 : index
    %c0_21 = arith.constant 0 : index
    %23 = vector.load %arg2[%c0_19, %22, %c1_20, %c0_21] : memref<4x9x9x128xbf16, #tpu.memory_space<vmem>>, vector<1x8x8x128xbf16>
    %24 = vector.shape_cast %23 : vector<1x8x8x128xbf16> to vector<8x8x128xbf16>
    %25 = vector.shape_cast %24 : vector<8x8x128xbf16> to vector<64x128xbf16>
    %c2 = arith.constant 2 : index
    %c0_22 = arith.constant 0 : index
    %c0_23 = arith.constant 0 : index
    %26 = vector.load %arg3[%c2, %c0_22, %c0_23] : memref<9x128x128xbf16, #tpu.memory_space<vmem>>, vector<1x128x128xbf16>
    %27 = vector.shape_cast %26 : vector<1x128x128xbf16> to vector<128x128xbf16>
    %cst_24 = arith.constant dense<0.000000e+00> : vector<64x128xf32>
    %28 = tpu.matmul %25, %27, %cst_24 {dimension_numbers = #tpu.dot_dimension_numbers<[1], [0], [0], [1], [0, 0, 1, 1], [], []>} : vector<64x128xbf16>, vector<128x128xbf16>, vector<64x128xf32> -> vector<64x128xf32>
    %c0_25 = arith.constant 0 : index
    %c0_26 = arith.constant 0 : index
    %29 = vector.load %arg6[%c0_25, %c0_26] : memref<64x128xf32, #tpu.memory_space<vmem>>, vector<64x128xf32>
    %30 = arith.addf %29, %28 : vector<64x128xf32>
    %c0_27 = arith.constant 0 : index
    %c0_28 = arith.constant 0 : index
    %31 = vector.load %arg6[%c0_27, %c0_28] : memref<64x128xf32, #tpu.memory_space<vmem>>, vector<64x128xf32>
    tpu.vector_store %arg6[%c0_27, %c0_28], %30 {strides = array<i32>} : memref<64x128xf32, #tpu.memory_space<vmem>>, vector<64x128xf32>,
    %c0_i32_29 = arith.constant 0 : i32
    %32 = arith.addi %0, %c0_i32_29 : i32
    %c2_30 = arith.constant 2 : index
    %33 = arith.index_cast %32 : i32 to index
    %c0_31 = arith.constant 0 : index
    %c0_32 = arith.constant 0 : index
    %34 = vector.load %arg2[%c2_30, %33, %c0_31, %c0_32] : memref<4x9x9x128xbf16, #tpu.memory_space<vmem>>, vector<1x8x8x128xbf16>
    %35 = vector.shape_cast %34 : vector<1x8x8x128xbf16> to vector<8x8x128xbf16>
    %36 = vector.shape_cast %35 : vector<8x8x128xbf16> to vector<64x128xbf16>
    %c3 = arith.constant 3 : index
    %c0_33 = arith.constant 0 : index
    %c0_34 = arith.constant 0 : index
    %37 = vector.load %arg3[%c3, %c0_33, %c0_34] : memref<9x128x128xbf16, #tpu.memory_space<vmem>>, vector<1x128x128xbf16>
    %38 = vector.shape_cast %37 : vector<1x128x128xbf16> to vector<128x128xbf16>
    %cst_35 = arith.constant dense<0.000000e+00> : vector<64x128xf32>
    %39 = tpu.matmul %36, %38, %cst_35 {dimension_numbers = #tpu.dot_dimension_numbers<[1], [0], [0], [1], [0, 0, 1, 1], [], []>} : vector<64x128xbf16>, vector<128x128xbf16>, vector<64x128xf32> -> vector<64x128xf32>
    %c0_36 = arith.constant 0 : index
    %c0_37 = arith.constant 0 : index
    %40 = vector.load %arg6[%c0_36, %c0_37] : memref<64x128xf32, #tpu.memory_space<vmem>>, vector<64x128xf32>
    %41 = arith.addf %40, %39 : vector<64x128xf32>
    %c0_38 = arith.constant 0 : index
    %c0_39 = arith.constant 0 : index
    %42 = vector.load %arg6[%c0_38, %c0_39] : memref<64x128xf32, #tpu.memory_space<vmem>>, vector<64x128xf32>
    tpu.vector_store %arg6[%c0_38, %c0_39], %41 {strides = array<i32>} : memref<64x128xf32, #tpu.memory_space<vmem>>, vector<64x128xf32>,
    %c0_i32_40 = arith.constant 0 : i32
    %43 = arith.addi %0, %c0_i32_40 : i32
    %c3_41 = arith.constant 3 : index
    %44 = arith.index_cast %43 : i32 to index
    %c0_42 = arith.constant 0 : index
    %c0_43 = arith.constant 0 : index
    %45 = vector.load %arg2[%c3_41, %44, %c0_42, %c0_43] : memref<4x9x9x128xbf16, #tpu.memory_space<vmem>>, vector<1x8x8x128xbf16>
    %46 = vector.shape_cast %45 : vector<1x8x8x128xbf16> to vector<8x8x128xbf16>
    %47 = vector.shape_cast %46 : vector<8x8x128xbf16> to vector<64x128xbf16>
    %c4 = arith.constant 4 : index
    %c0_44 = arith.constant 0 : index
    %c0_45 = arith.constant 0 : index
    %48 = vector.load %arg3[%c4, %c0_44, %c0_45] : memref<9x128x128xbf16, #tpu.memory_space<vmem>>, vector<1x128x128xbf16>
    %49 = vector.shape_cast %48 : vector<1x128x128xbf16> to vector<128x128xbf16>
    %cst_46 = arith.constant dense<0.000000e+00> : vector<64x128xf32>
    %50 = tpu.matmul %47, %49, %cst_46 {dimension_numbers = #tpu.dot_dimension_numbers<[1], [0], [0], [1], [0, 0, 1, 1], [], []>} : vector<64x128xbf16>, vector<128x128xbf16>, vector<64x128xf32> -> vector<64x128xf32>
    %c0_47 = arith.constant 0 : index
    %c0_48 = arith.constant 0 : index
    %51 = vector.load %arg6[%c0_47, %c0_48] : memref<64x128xf32, #tpu.memory_space<vmem>>, vector<64x128xf32>
    %52 = arith.addf %51, %50 : vector<64x128xf32>
    %c0_49 = arith.constant 0 : index
    %c0_50 = arith.constant 0 : index
    %53 = vector.load %arg6[%c0_49, %c0_50] : memref<64x128xf32, #tpu.memory_space<vmem>>, vector<64x128xf32>
    tpu.vector_store %arg6[%c0_49, %c0_50], %52 {strides = array<i32>} : memref<64x128xf32, #tpu.memory_space<vmem>>, vector<64x128xf32>,
    %c0_i32_51 = arith.constant 0 : i32
    %54 = arith.addi %0, %c0_i32_51 : i32
    %c2_52 = arith.constant 2 : index
    %55 = arith.index_cast %54 : i32 to index
    %c1_53 = arith.constant 1 : index
    %c0_54 = arith.constant 0 : index
    %56 = vector.load %arg2[%c2_52, %55, %c1_53, %c0_54] : memref<4x9x9x128xbf16, #tpu.memory_space<vmem>>, vector<1x8x8x128xbf16>
    %57 = vector.shape_cast %56 : vector<1x8x8x128xbf16> to vector<8x8x128xbf16>
    %58 = vector.shape_cast %57 : vector<8x8x128xbf16> to vector<64x128xbf16>
    %c5 = arith.constant 5 : index
    %c0_55 = arith.constant 0 : index
    %c0_56 = arith.constant 0 : index
    %59 = vector.load %arg3[%c5, %c0_55, %c0_56] : memref<9x128x128xbf16, #tpu.memory_space<vmem>>, vector<1x128x128xbf16>
    %60 = vector.shape_cast %59 : vector<1x128x128xbf16> to vector<128x128xbf16>
    %cst_57 = arith.constant dense<0.000000e+00> : vector<64x128xf32>
    %61 = tpu.matmul %58, %60, %cst_57 {dimension_numbers = #tpu.dot_dimension_numbers<[1], [0], [0], [1], [0, 0, 1, 1], [], []>} : vector<64x128xbf16>, vector<128x128xbf16>, vector<64x128xf32> -> vector<64x128xf32>
    %c0_58 = arith.constant 0 : index
    %c0_59 = arith.constant 0 : index
    %62 = vector.load %arg6[%c0_58, %c0_59] : memref<64x128xf32, #tpu.memory_space<vmem>>, vector<64x128xf32>
    %63 = arith.addf %62, %61 : vector<64x128xf32>
    %c0_60 = arith.constant 0 : index
    %c0_61 = arith.constant 0 : index
    %64 = vector.load %arg6[%c0_60, %c0_61] : memref<64x128xf32, #tpu.memory_space<vmem>>, vector<64x128xf32>
    tpu.vector_store %arg6[%c0_60, %c0_61], %63 {strides = array<i32>} : memref<64x128xf32, #tpu.memory_space<vmem>>, vector<64x128xf32>,
    %c1_i32 = arith.constant 1 : i32
    %65 = arith.addi %0, %c1_i32 : i32
    %c0_62 = arith.constant 0 : index
    %66 = arith.index_cast %65 : i32 to index
    %c0_63 = arith.constant 0 : index
    %c0_64 = arith.constant 0 : index
    %67 = vector.load %arg2[%c0_62, %66, %c0_63, %c0_64] : memref<4x9x9x128xbf16, #tpu.memory_space<vmem>>, vector<1x8x8x128xbf16>
    %68 = vector.shape_cast %67 : vector<1x8x8x128xbf16> to vector<8x8x128xbf16>
    %69 = vector.shape_cast %68 : vector<8x8x128xbf16> to vector<64x128xbf16>
    %c6 = arith.constant 6 : index
    %c0_65 = arith.constant 0 : index
    %c0_66 = arith.constant 0 : index
    %70 = vector.load %arg3[%c6, %c0_65, %c0_66] : memref<9x128x128xbf16, #tpu.memory_space<vmem>>, vector<1x128x128xbf16>
    %71 = vector.shape_cast %70 : vector<1x128x128xbf16> to vector<128x128xbf16>
    %cst_67 = arith.constant dense<0.000000e+00> : vector<64x128xf32>
    %72 = tpu.matmul %69, %71, %cst_67 {dimension_numbers = #tpu.dot_dimension_numbers<[1], [0], [0], [1], [0, 0, 1, 1], [], []>} : vector<64x128xbf16>, vector<128x128xbf16>, vector<64x128xf32> -> vector<64x128xf32>
    %c0_68 = arith.constant 0 : index
    %c0_69 = arith.constant 0 : index
    %73 = vector.load %arg6[%c0_68, %c0_69] : memref<64x128xf32, #tpu.memory_space<vmem>>, vector<64x128xf32>
    %74 = arith.addf %73, %72 : vector<64x128xf32>
    %c0_70 = arith.constant 0 : index
    %c0_71 = arith.constant 0 : index
    %75 = vector.load %arg6[%c0_70, %c0_71] : memref<64x128xf32, #tpu.memory_space<vmem>>, vector<64x128xf32>
    tpu.vector_store %arg6[%c0_70, %c0_71], %74 {strides = array<i32>} : memref<64x128xf32, #tpu.memory_space<vmem>>, vector<64x128xf32>,
    %c1_i32_72 = arith.constant 1 : i32
    %76 = arith.addi %0, %c1_i32_72 : i32
    %c1_73 = arith.constant 1 : index
    %77 = arith.index_cast %76 : i32 to index
    %c0_74 = arith.constant 0 : index
    %c0_75 = arith.constant 0 : index
    %78 = vector.load %arg2[%c1_73, %77, %c0_74, %c0_75] : memref<4x9x9x128xbf16, #tpu.memory_space<vmem>>, vector<1x8x8x128xbf16>
    %79 = vector.shape_cast %78 : vector<1x8x8x128xbf16> to vector<8x8x128xbf16>
    %80 = vector.shape_cast %79 : vector<8x8x128xbf16> to vector<64x128xbf16>
    %c7 = arith.constant 7 : index
    %c0_76 = arith.constant 0 : index
    %c0_77 = arith.constant 0 : index
    %81 = vector.load %arg3[%c7, %c0_76, %c0_77] : memref<9x128x128xbf16, #tpu.memory_space<vmem>>, vector<1x128x128xbf16>
    %82 = vector.shape_cast %81 : vector<1x128x128xbf16> to vector<128x128xbf16>
    %cst_78 = arith.constant dense<0.000000e+00> : vector<64x128xf32>
    %83 = tpu.matmul %80, %82, %cst_78 {dimension_numbers = #tpu.dot_dimension_numbers<[1], [0], [0], [1], [0, 0, 1, 1], [], []>} : vector<64x128xbf16>, vector<128x128xbf16>, vector<64x128xf32> -> vector<64x128xf32>
    %c0_79 = arith.constant 0 : index
    %c0_80 = arith.constant 0 : index
    %84 = vector.load %arg6[%c0_79, %c0_80] : memref<64x128xf32, #tpu.memory_space<vmem>>, vector<64x128xf32>
    %85 = arith.addf %84, %83 : vector<64x128xf32>
    %c0_81 = arith.constant 0 : index
    %c0_82 = arith.constant 0 : index
    %86 = vector.load %arg6[%c0_81, %c0_82] : memref<64x128xf32, #tpu.memory_space<vmem>>, vector<64x128xf32>
    tpu.vector_store %arg6[%c0_81, %c0_82], %85 {strides = array<i32>} : memref<64x128xf32, #tpu.memory_space<vmem>>, vector<64x128xf32>,
    %c1_i32_83 = arith.constant 1 : i32
    %87 = arith.addi %0, %c1_i32_83 : i32
    %c0_84 = arith.constant 0 : index
    %88 = arith.index_cast %87 : i32 to index
    %c1_85 = arith.constant 1 : index
    %c0_86 = arith.constant 0 : index
    %89 = vector.load %arg2[%c0_84, %88, %c1_85, %c0_86] : memref<4x9x9x128xbf16, #tpu.memory_space<vmem>>, vector<1x8x8x128xbf16>
    %90 = vector.shape_cast %89 : vector<1x8x8x128xbf16> to vector<8x8x128xbf16>
    %91 = vector.shape_cast %90 : vector<8x8x128xbf16> to vector<64x128xbf16>
    %c8 = arith.constant 8 : index
    %c0_87 = arith.constant 0 : index
    %c0_88 = arith.constant 0 : index
    %92 = vector.load %arg3[%c8, %c0_87, %c0_88] : memref<9x128x128xbf16, #tpu.memory_space<vmem>>, vector<1x128x128xbf16>
    %93 = vector.shape_cast %92 : vector<1x128x128xbf16> to vector<128x128xbf16>
    %cst_89 = arith.constant dense<0.000000e+00> : vector<64x128xf32>
    %94 = tpu.matmul %91, %93, %cst_89 {dimension_numbers = #tpu.dot_dimension_numbers<[1], [0], [0], [1], [0, 0, 1, 1], [], []>} : vector<64x128xbf16>, vector<128x128xbf16>, vector<64x128xf32> -> vector<64x128xf32>
    %c0_90 = arith.constant 0 : index
    %c0_91 = arith.constant 0 : index
    %95 = vector.load %arg6[%c0_90, %c0_91] : memref<64x128xf32, #tpu.memory_space<vmem>>, vector<64x128xf32>
    %96 = arith.addf %95, %94 : vector<64x128xf32>
    %c0_92 = arith.constant 0 : index
    %c0_93 = arith.constant 0 : index
    %97 = vector.load %arg6[%c0_92, %c0_93] : memref<64x128xf32, #tpu.memory_space<vmem>>, vector<64x128xf32>
    tpu.vector_store %arg6[%c0_92, %c0_93], %96 {strides = array<i32>} : memref<64x128xf32, #tpu.memory_space<vmem>>, vector<64x128xf32>,
    %c0_94 = arith.constant 0 : index
    %c0_95 = arith.constant 0 : index
    %98 = vector.load %arg6[%c0_94, %c0_95] : memref<64x128xf32, #tpu.memory_space<vmem>>, vector<64x128xf32>
    %c0_96 = arith.constant 0 : index
    %c0_97 = arith.constant 0 : index
    %99 = vector.load %arg4[%c0_96, %c0_97] : memref<1x128xf32, #tpu.memory_space<vmem>>, vector<1x128xf32>
    %100 = vector.broadcast %99 : vector<1x128xf32> to vector<64x128xf32>
    %101 = arith.addf %98, %100 : vector<64x128xf32>
    %cst_98 = arith.constant 0.000000e+00 : f32
    %102 = vector.broadcast %cst_98 : f32 to vector<64x128xf32>
    %103 = arith.maximumf %101, %102 : vector<64x128xf32>
    %104 = vector.shape_cast %103 : vector<64x128xf32> to vector<8x8x128xf32>
    %105 = arith.truncf %104 : vector<8x8x128xf32> to vector<8x8x128xbf16>
    %c0_99 = arith.constant 0 : index
    %c0_100 = arith.constant 0 : index
    %c0_101 = arith.constant 0 : index
    %c0_102 = arith.constant 0 : index
    %106 = vector.load %arg5[%c0_99, %c0_100, %c0_101, %c0_102] : memref<1x8x8x128xbf16, #tpu.memory_space<vmem>>, vector<1x8x8x128xbf16>
    %107 = vector.shape_cast %106 : vector<1x8x8x128xbf16> to vector<8x8x128xbf16>
    %108 = vector.shape_cast %105 : vector<8x8x128xbf16> to vector<1x8x8x128xbf16>
    tpu.vector_store %arg5[%c0_99, %c0_100, %c0_101, %c0_102], %108 {strides = array<i32>} : memref<1x8x8x128xbf16, #tpu.memory_space<vmem>>, vector<1x8x8x128xbf16>,
    return
  }
  func.func @transform_0(%arg0: i32, %arg1: i32) -> (i32, i32, i32, i32) {
    %c0_i32 = arith.constant 0 : i32
    %c0_i32_0 = arith.constant 0 : i32
    %c0_i32_1 = arith.constant 0 : i32
    %c0_i32_2 = arith.constant 0 : i32
    return %arg0, %c0_i32, %c0_i32_0, %c0_i32_1 : i32, i32, i32, i32
  }
  func.func @transform_1(%arg0: i32, %arg1: i32) -> (i32, i32, i32) {
    %c0_i32 = arith.constant 0 : i32
    %c0_i32_0 = arith.constant 0 : i32
    %c0_i32_1 = arith.constant 0 : i32
    %c0_i32_2 = arith.constant 0 : i32
    return %c0_i32, %c0_i32_0, %c0_i32_1 : i32, i32, i32
  }
  func.func @transform_2(%arg0: i32, %arg1: i32) -> (i32, i32) {
    %c0_i32 = arith.constant 0 : i32
    %c0_i32_0 = arith.constant 0 : i32
    %c0_i32_1 = arith.constant 0 : i32
    return %c0_i32, %c0_i32_0 : i32, i32
  }
  func.func @transform_3(%arg0: i32, %arg1: i32) -> (i32, i32, i32, i32) {
    %c0_i32 = arith.constant 0 : i32
    %c0_i32_0 = arith.constant 0 : i32
    %c0_i32_1 = arith.constant 0 : i32
    return %arg0, %arg1, %c0_i32, %c0_i32_0 : i32, i32, i32, i32
  }
}

module attributes {stable_mosaic.version = 11 : i64} {
  func.func @_conv3_ds_res_kernel(%arg0: i32, %arg1: memref<128x128xbf16, #tpu.memory_space<vmem>>, %arg2: memref<128x8xbf16, #tpu.memory_space<vmem>>, %arg3: memref<128x128xbf16, #tpu.memory_space<vmem>>, %arg4: memref<8x128xbf16, #tpu.memory_space<vmem>>, %arg5: memref<1x128xf32, #tpu.memory_space<vmem>>, %arg6: memref<128x128xbf16, #tpu.memory_space<vmem>>) attributes {dimension_semantics = [#tpu.dimension_semantics<parallel>], iteration_bounds = array<i64: 1>, scalar_prefetch = 0 : i64, scratch_operands = 0 : i64, tpu.core_type = #tpu.core_type<tc>, window_params = [{transform_indices = @transform_0, window_bounds = array<i64: 128, 128>}, {transform_indices = @transform_1, window_bounds = array<i64: 128, 8>}, {pipeline_mode = #tpu.pipeline_mode<synchronous>, transform_indices = @transform_2, window_bounds = array<i64: 128, 128>}, {pipeline_mode = #tpu.pipeline_mode<synchronous>, transform_indices = @transform_3, window_bounds = array<i64: 8, 128>}, {pipeline_mode = #tpu.pipeline_mode<synchronous>, transform_indices = @transform_4, window_bounds = array<i64: 1, 128>}, {transform_indices = @transform_5, window_bounds = array<i64: 128, 128>}]} {
    %c0 = arith.constant 0 : index
    %c0_0 = arith.constant 0 : index
    %0 = vector.load %arg1[%c0, %c0_0] : memref<128x128xbf16, #tpu.memory_space<vmem>>, vector<128x128xbf16>
    %c0_1 = arith.constant 0 : index
    %c0_2 = arith.constant 0 : index
    %1 = vector.load %arg3[%c0_1, %c0_2] : memref<128x128xbf16, #tpu.memory_space<vmem>>, vector<128x128xbf16>
    %cst = arith.constant dense<0.000000e+00> : vector<128x128xf32>
    %2 = tpu.matmul %0, %1, %cst {dimension_numbers = #tpu.dot_dimension_numbers<[1], [0], [0], [1], [0, 0, 1, 1], [], []>} : vector<128x128xbf16>, vector<128x128xbf16>, vector<128x128xf32> -> vector<128x128xf32>
    %c0_3 = arith.constant 0 : index
    %c0_4 = arith.constant 0 : index
    %3 = vector.load %arg2[%c0_3, %c0_4] : memref<128x8xbf16, #tpu.memory_space<vmem>>, vector<128x8xbf16>
    %c0_5 = arith.constant 0 : index
    %c0_6 = arith.constant 0 : index
    %4 = vector.load %arg4[%c0_5, %c0_6] : memref<8x128xbf16, #tpu.memory_space<vmem>>, vector<8x128xbf16>
    %cst_7 = arith.constant dense<0.000000e+00> : vector<128x128xf32>
    %5 = tpu.matmul %3, %4, %cst_7 {dimension_numbers = #tpu.dot_dimension_numbers<[1], [0], [0], [1], [0, 0, 1, 1], [], []>} : vector<128x8xbf16>, vector<8x128xbf16>, vector<128x128xf32> -> vector<128x128xf32>
    %6 = arith.addf %2, %5 : vector<128x128xf32>
    %c0_8 = arith.constant 0 : index
    %c0_9 = arith.constant 0 : index
    %7 = vector.load %arg5[%c0_8, %c0_9] : memref<1x128xf32, #tpu.memory_space<vmem>>, vector<1x128xf32>
    %8 = vector.broadcast %7 : vector<1x128xf32> to vector<128x128xf32>
    %9 = arith.addf %6, %8 : vector<128x128xf32>
    %cst_10 = arith.constant 0.000000e+00 : f32
    %10 = vector.broadcast %cst_10 : f32 to vector<128x128xf32>
    %11 = arith.maximumf %9, %10 : vector<128x128xf32>
    %12 = arith.truncf %11 : vector<128x128xf32> to vector<128x128xbf16>
    %c0_11 = arith.constant 0 : index
    %c0_12 = arith.constant 0 : index
    %13 = vector.load %arg6[%c0_11, %c0_12] : memref<128x128xbf16, #tpu.memory_space<vmem>>, vector<128x128xbf16>
    tpu.vector_store %arg6[%c0_11, %c0_12], %12 {strides = array<i32>} : memref<128x128xbf16, #tpu.memory_space<vmem>>, vector<128x128xbf16>,
    return
  }
  func.func @transform_0(%arg0: i32) -> (i32, i32) {
    %c0_i32 = arith.constant 0 : i32
    %c0_i32_0 = arith.constant 0 : i32
    return %arg0, %c0_i32 : i32, i32
  }
  func.func @transform_1(%arg0: i32) -> (i32, i32) {
    %c0_i32 = arith.constant 0 : i32
    %c0_i32_0 = arith.constant 0 : i32
    return %arg0, %c0_i32 : i32, i32
  }
  func.func @transform_2(%arg0: i32) -> (i32, i32) {
    %c0_i32 = arith.constant 0 : i32
    %c0_i32_0 = arith.constant 0 : i32
    %c0_i32_1 = arith.constant 0 : i32
    return %c0_i32, %c0_i32_0 : i32, i32
  }
  func.func @transform_3(%arg0: i32) -> (i32, i32) {
    %c0_i32 = arith.constant 0 : i32
    %c0_i32_0 = arith.constant 0 : i32
    %c0_i32_1 = arith.constant 0 : i32
    return %c0_i32, %c0_i32_0 : i32, i32
  }
  func.func @transform_4(%arg0: i32) -> (i32, i32) {
    %c0_i32 = arith.constant 0 : i32
    %c0_i32_0 = arith.constant 0 : i32
    %c0_i32_1 = arith.constant 0 : i32
    return %c0_i32, %c0_i32_0 : i32, i32
  }
  func.func @transform_5(%arg0: i32) -> (i32, i32) {
    %c0_i32 = arith.constant 0 : i32
    %c0_i32_0 = arith.constant 0 : i32
    return %arg0, %c0_i32 : i32, i32
  }
}

</mosaic_0001>

<bundles_post_ra>
// kernel: bottleneck_forward.3
= control target key start
LH: loop header
LB: loop body
LE: loop exit
PB: predicated region body
PF: predicated region fallthrough
CT: control target
= control target key end

     0   :  { %s1067_s12 = smov 0   ;;  %s1183_s0 = inlined_call_operand.vmem [shape: bf16[512,8], index: 0, kind: input, shape index: {}]   ;;  %s1184_s1 = inlined_call_operand.vmem [shape: bf16[8,128], index: 1, kind: input, shape index: {}]   ;;  %s1185_s2 = inlined_call_operand.vmem [shape: f32[1,128], index: 2, kind: input, shape index: {}]   ;;  %s1186_s3 = inlined_call_operand.vmem [shape: bf16[512,128], index: 3, kind: output, shape index: {}]  }
   0x1 LB: > { %s757_s13 = sadd.s32 4294967295, %s1045_s12   ;;  %p761_p0 = scmp.ge.s32.totalorder %s1045_s12, 1  ;;  %s1045_s12 = sphi %s1067_s12, %s13_s12  }
   0x2   : > { %p138_p1 = scmp.lt.s32.totalorder %s1045_s12, 3 }
   0x4   : > { %p139_p2 = pnand %p761_p0, %p138_p1 }
   0x5   : > { %v207_v0 = vld [vmem:[%s1184_s1] sm:$0xf] (!%p139_p2)  ;;  %vm344_vm0 = vcmask (!%p139_p2), 1043456   ;;  %s762_s16 = sshll.u32 (!%p139_p2), %s757_s13, 5  ;;  %vm295_vm1 = vcmask (!%p139_p2), 64512  }
   0x6   : > { %142 = sbr.rel (%p139_p2) target bundleno = 265 (0x109), region = 32  ;;  %1013 = vmatprep.subr.msk.bf16.mxu0 (!%p139_p2), %vm344_vm0, %v207_v0  ;;  %1014 = vmatprep.subr.msk.bf16.mxu1 (!%p139_p2), %vm344_vm0, %v207_v0  ;;  %v346_v1 = vsel (!%p139_p2), %vm344_vm0, %v207_v0, 0  ;;  %p163_p3 = scmp.lt.s32.totalorder (!%p139_p2), %s762_s16, 63  ;;  %v1123_v18 = vld [vmem:[%s1185_s2] ss:$0 sm:$0xff] (!%p139_p2) }
   0x7   : > { %978 = vmatpush3.bf16.msra.mxu0 (!%p139_p2), %v346_v1  ;;  %1012 = vmatpush3.bf16.msra.mxu1 (!%p139_p2), %v346_v1 }
   0xd   : > { %s1188_s16 = smov (!%p163_p3, %s762_s16), 63 }
   0xe   : > { %s763_s17 = sshll.u32 %s1188_s16, 2 }
   0xf   : > { %s1086_s20 = scalar_lea.vmem %s1183_s0, %s763_s17  ;;  %s1138_s25 = scalar_lea.vmem %s1186_s3, %s763_s17 }
  0x10   : > { %v1023_v2 = vld [vmem:[%s1086_s20] sm:$0xff]   ;;  %v1025_v4 = vld [vmem:[%s1086_s20 + $0x8] sm:$0xff]   ;;  %v1027_v6 = vld [vmem:[%s1086_s20 + $0x10] sm:$0xff]  }
  0x11   : > { %v1024_v3 = vld [vmem:[%s1086_s20 + $0x40] sm:$0xff]   ;;  %979 = vmatprep.mubr.msk.bf16.mxu0 %vm295_vm1, %v1023_v2  ;;  %v1026_v5 = vld [vmem:[%s1086_s20 + $0x48] sm:$0xff]   ;;  %v1028_v7 = vld [vmem:[%s1086_s20 + $0x50] sm:$0xff]  }
  0x12   : > { %995 = vmatprep.mubr.msk.bf16.mxu1 %vm295_vm1, %v1024_v3  ;;  %980 = vmatmul.mubr.msk.bf16.vlgmr.msra.gmra.mrb[0].mxu0 %vm295_vm1, %v1025_v4  ;;  %v1029_v8 = vld [vmem:[%s1086_s20 + $0x18] sm:$0xff]   ;;  %v1031_v10 = vld [vmem:[%s1086_s20 + $0x20] sm:$0xff]   ;;  %v1033_v12 = vld [vmem:[%s1086_s20 + $0x28] sm:$0xff]  }
  0x13   : > { %996 = vmatmul.mubr.msk.bf16.vlgmr.msra.gmra.mrb[0].mxu1 %vm295_vm1, %v1026_v5  ;;  %983 = vmatprep.mubr.msk.bf16.mxu0 %vm295_vm1, %v1027_v6  ;;  %v1030_v9 = vld [vmem:[%s1086_s20 + $0x58] sm:$0xff]   ;;  %v1032_v11 = vld [vmem:[%s1086_s20 + $0x60] sm:$0xff]   ;;  %v1034_v13 = vld [vmem:[%s1086_s20 + $0x68] sm:$0xff]  }
  0x14   : > { %999 = vmatprep.mubr.msk.bf16.mxu1 %vm295_vm1, %v1028_v7  ;;  %v1035_v14 = vld [vmem:[%s1086_s20 + $0x30] sm:$0xff]   ;;  %v1037_v16 = vld [vmem:[%s1086_s20 + $0x38] sm:$0xff]  }
  0x15   : > { %v1036_v15 = vld [vmem:[%s1086_s20 + $0x70] sm:$0xff]   ;;  %v1038_v17 = vld [vmem:[%s1086_s20 + $0x78] sm:$0xff]  }
  0x1a   : > { %984 = vmatmul.mubr.msk.bf16.gmra.mrb[4].mxu0 %vm295_vm1, %v1029_v8 }
  0x1b   : > { %1000 = vmatmul.mubr.msk.bf16.gmra.mrb[4].mxu1 %vm295_vm1, %v1030_v9  ;;  %987 = vmatprep.mubr.msk.bf16.mxu0 %vm295_vm1, %v1031_v10 }
  0x1c   : > { %1003 = vmatprep.mubr.msk.bf16.mxu1 %vm295_vm1, %v1032_v11 }
  0x22   : > { %988 = vmatmul.mubr.msk.bf16.gmra.mrb[8].mxu0 %vm295_vm1, %v1033_v12 }
  0x23   : > { %1004 = vmatmul.mubr.msk.bf16.gmra.mrb[8].mxu1 %vm295_vm1, %v1034_v13  ;;  %991 = vmatprep.mubr.msk.bf16.mxu0 %vm295_vm1, %v1035_v14 }
  0x24   : > { %1007 = vmatprep.mubr.msk.bf16.mxu1 %vm295_vm1, %v1036_v15 }
  0x2a   : > { %992 = vmatmul.mubr.msk.bf16.gmra.mrb[12].mxu0 %vm295_vm1, %v1037_v16 }
  0x2b   : > { %1008 = vmatmul.mubr.msk.bf16.gmra.mrb[12].mxu1 %vm295_vm1, %v1038_v17 }
  0xe5   : > { %v981_v19 = vpop.f32.mrb[0].mxu0 }
  0xe6   : > { %v391_v20 = vadd.f32 %v981_v19, %v1123_v18  ;;  %v997_v21 = vpop.f32.mrb[0].mxu1  ;;  %v382_v22 = vpop.f32.mrb[1].mxu0 }
  0xe7   : > { %v455_v23 = vadd.f32 %v997_v21, %v1123_v18  ;;  %v383_v24 = vadd.f32 %v1123_v18, %v382_v22  ;;  %v446_v25 = vpop.f32.mrb[1].mxu1  ;;  %v982_v26 = vpop.f32.mrb[2].mxu0 }
  0xe8   : > { %v447_v27 = vadd.f32 %v1123_v18, %v446_v25  ;;  %v394_v28 = vadd.f32 %v982_v26, %v1123_v18  ;;  %v998_v29 = vpop.f32.mrb[2].mxu1  ;;  %v385_v30 = vpop.f32.mrb[3].mxu0  ;;  %v511_v34 = vmax.f32 %v391_v20, 0.0 }
  0xe9   : > { %v458_v31 = vadd.f32 %v998_v29, %v1123_v18  ;;  %v386_v32 = vadd.f32 %v1123_v18, %v385_v30  ;;  %v449_v33 = vpop.f32.mrb[3].mxu1  ;;  %v527_v37 = vmax.f32 %v455_v23, 0.0  ;;  %v509_v38 = vmax.f32 %v383_v24, 0.0 }
  0xea   : > { %v512_v35 = vmax.f32 %v394_v28, 0.0  ;;  %v450_v36 = vadd.f32 %v1123_v18, %v449_v33  ;;  %v525_v41 = vmax.f32 %v447_v27, 0.0 }
  0xeb   : > { %v528_v39 = vmax.f32 %v458_v31, 0.0  ;;  %v510_v40 = vmax.f32 %v386_v32, 0.0 }
  0xec   : > { %v873_v42 = vpack.c.bf16 %v512_v35, %v511_v34  ;;  %v526_v43 = vmax.f32 %v450_v36, 0.0 }
  0xed   : > { %v913_v44 = vpack.c.bf16 %v528_v39, %v527_v37  ;;  %v868_v45 = vpack.c.bf16 %v510_v40, %v509_v38  ;;  %v985_v46 = vpop.f32.mrb[4].mxu0 }
  0xee   : > { %945 = vst [vmem:[%s1138_s25 + $0x8] sm:$0xff] %v873_v42   ;;  %v908_v47 = vpack.c.bf16 %v526_v43, %v525_v41  ;;  %v407_v48 = vadd.f32 %v985_v46, %v1123_v18  ;;  %v1001_v49 = vpop.f32.mrb[4].mxu1  ;;  %v398_v50 = vpop.f32.mrb[5].mxu0 }
  0xef   : > { %953 = vst [vmem:[%s1138_s25 + $0x48] sm:$0xff] %v913_v44   ;;  %869 = vst [vmem:[%s1138_s25] sm:$0xff] %v868_v45   ;;  %v471_v51 = vadd.f32 %v1001_v49, %v1123_v18  ;;  %v399_v52 = vadd.f32 %v1123_v18, %v398_v50  ;;  %v462_v53 = vpop.f32.mrb[5].mxu1  ;;  %v986_v54 = vpop.f32.mrb[6].mxu0 }
  0xf0   : > { %952 = vst [vmem:[%s1138_s25 + $0x40] sm:$0xff] %v908_v47   ;;  %v463_v55 = vadd.f32 %v1123_v18, %v462_v53  ;;  %v410_v56 = vadd.f32 %v986_v54, %v1123_v18  ;;  %v1002_v57 = vpop.f32.mrb[6].mxu1  ;;  %v401_v58 = vpop.f32.mrb[7].mxu0  ;;  %v515_v62 = vmax.f32 %v407_v48, 0.0 }
  0xf1   : > { %v474_v59 = vadd.f32 %v1002_v57, %v1123_v18  ;;  %v402_v60 = vadd.f32 %v1123_v18, %v401_v58  ;;  %v465_v61 = vpop.f32.mrb[7].mxu1  ;;  %v531_v1 = vmax.f32 %v471_v51, 0.0  ;;  %v513_v2 = vmax.f32 %v399_v52, 0.0 }
  0xf2   : > { %v516_v63 = vmax.f32 %v410_v56, 0.0  ;;  %v466_v0 = vadd.f32 %v1123_v18, %v465_v61  ;;  %v529_v5 = vmax.f32 %v463_v55, 0.0 }
  0xf3   : > { %v532_v3 = vmax.f32 %v474_v59, 0.0  ;;  %v514_v4 = vmax.f32 %v402_v60, 0.0 }
  0xf4   : > { %v883_v6 = vpack.c.bf16 %v516_v63, %v515_v62  ;;  %v530_v7 = vmax.f32 %v466_v0, 0.0 }
  0xf5   : > { %v923_v8 = vpack.c.bf16 %v532_v3, %v531_v1  ;;  %v878_v9 = vpack.c.bf16 %v514_v4, %v513_v2  ;;  %v989_v10 = vpop.f32.mrb[8].mxu0 }
  0xf6   : > { %947 = vst [vmem:[%s1138_s25 + $0x18] sm:$0xff] %v883_v6   ;;  %v918_v11 = vpack.c.bf16 %v530_v7, %v529_v5  ;;  %v423_v12 = vadd.f32 %v989_v10, %v1123_v18  ;;  %v1005_v13 = vpop.f32.mrb[8].mxu1  ;;  %v414_v14 = vpop.f32.mrb[9].mxu0 }
  0xf7   : > { %955 = vst [vmem:[%s1138_s25 + $0x58] sm:$0xff] %v923_v8   ;;  %946 = vst [vmem:[%s1138_s25 + $0x10] sm:$0xff] %v878_v9   ;;  %v487_v15 = vadd.f32 %v1005_v13, %v1123_v18  ;;  %v415_v16 = vadd.f32 %v1123_v18, %v414_v14  ;;  %v478_v17 = vpop.f32.mrb[9].mxu1  ;;  %v990_v19 = vpop.f32.mrb[10].mxu0 }
  0xf8   : > { %954 = vst [vmem:[%s1138_s25 + $0x50] sm:$0xff] %v918_v11   ;;  %v479_v20 = vadd.f32 %v1123_v18, %v478_v17  ;;  %v426_v21 = vadd.f32 %v990_v19, %v1123_v18  ;;  %v1006_v22 = vpop.f32.mrb[10].mxu1  ;;  %v417_v23 = vpop.f32.mrb[11].mxu0  ;;  %v519_v27 = vmax.f32 %v423_v12, 0.0 }
  0xf9   : > { %v490_v24 = vadd.f32 %v1006_v22, %v1123_v18  ;;  %v418_v25 = vadd.f32 %v1123_v18, %v417_v23  ;;  %v481_v26 = vpop.f32.mrb[11].mxu1  ;;  %v535_v30 = vmax.f32 %v487_v15, 0.0  ;;  %v517_v31 = vmax.f32 %v415_v16, 0.0 }
  0xfa   : > { %v520_v28 = vmax.f32 %v426_v21, 0.0  ;;  %v482_v29 = vadd.f32 %v1123_v18, %v481_v26  ;;  %v533_v34 = vmax.f32 %v479_v20, 0.0 }
  0xfb   : > { %v536_v32 = vmax.f32 %v490_v24, 0.0  ;;  %v518_v33 = vmax.f32 %v418_v25, 0.0 }
  0xfc   : > { %v893_v35 = vpack.c.bf16 %v520_v28, %v519_v27  ;;  %v534_v36 = vmax.f32 %v482_v29, 0.0 }
  0xfd   : > { %v933_v37 = vpack.c.bf16 %v536_v32, %v535_v30  ;;  %v888_v38 = vpack.c.bf16 %v518_v33, %v517_v31  ;;  %v993_v39 = vpop.f32.mrb[12].mxu0 }
  0xfe   : > { %949 = vst [vmem:[%s1138_s25 + $0x28] sm:$0xff] %v893_v35   ;;  %v928_v40 = vpack.c.bf16 %v534_v36, %v533_v34  ;;  %v439_v41 = vadd.f32 %v993_v39, %v1123_v18  ;;  %v1009_v42 = vpop.f32.mrb[12].mxu1  ;;  %v430_v43 = vpop.f32.mrb[13].mxu0 }
  0xff   : > { %957 = vst [vmem:[%s1138_s25 + $0x68] sm:$0xff] %v933_v37   ;;  %948 = vst [vmem:[%s1138_s25 + $0x20] sm:$0xff] %v888_v38   ;;  %v503_v44 = vadd.f32 %v1009_v42, %v1123_v18  ;;  %v431_v45 = vadd.f32 %v1123_v18, %v430_v43  ;;  %v494_v46 = vpop.f32.mrb[13].mxu1  ;;  %v994_v47 = vpop.f32.mrb[14].mxu0 }
 0x100   : > { %956 = vst [vmem:[%s1138_s25 + $0x60] sm:$0xff] %v928_v40   ;;  %v495_v48 = vadd.f32 %v1123_v18, %v494_v46  ;;  %v442_v49 = vadd.f32 %v994_v47, %v1123_v18  ;;  %v1010_v50 = vpop.f32.mrb[14].mxu1  ;;  %v433_v51 = vpop.f32.mrb[15].mxu0  ;;  %v523_v55 = vmax.f32 %v439_v41, 0.0 }
 0x101   : > { %v506_v52 = vadd.f32 %v1010_v50, %v1123_v18  ;;  %v434_v53 = vadd.f32 %v1123_v18, %v433_v51  ;;  %v497_v54 = vpop.f32.mrb[15].mxu1  ;;  %v539_v58 = vmax.f32 %v503_v44, 0.0  ;;  %v521_v59 = vmax.f32 %v431_v45, 0.0 }
 0x102   : > { %v524_v56 = vmax.f32 %v442_v49, 0.0  ;;  %v498_v57 = vadd.f32 %v1123_v18, %v497_v54  ;;  %v537_v62 = vmax.f32 %v495_v48, 0.0 }
 0x103   : > { %v540_v60 = vmax.f32 %v506_v52, 0.0  ;;  %v522_v61 = vmax.f32 %v434_v53, 0.0 }
 0x104   : > { %v903_v63 = vpack.c.bf16 %v524_v56, %v523_v55  ;;  %v538_v0 = vmax.f32 %v498_v57, 0.0 }
 0x105   : > { %v943_v1 = vpack.c.bf16 %v540_v60, %v539_v58  ;;  %v898_v2 = vpack.c.bf16 %v522_v61, %v521_v59 }
 0x106   : > { %951 = vst [vmem:[%s1138_s25 + $0x38] sm:$0xff] %v903_v63   ;;  %v938_v3 = vpack.c.bf16 %v538_v0, %v537_v62 }
 0x107   : > { %959 = vst [vmem:[%s1138_s25 + $0x78] sm:$0xff] %v943_v1   ;;  %950 = vst [vmem:[%s1138_s25 + $0x30] sm:$0xff] %v898_v2  }
 0x108   : > { %958 = vst [vmem:[%s1138_s25 + $0x70] sm:$0xff] %v938_v3  }
 0x109 PF: > { %s13_s12 = sadd.s32 1, %s1045_s12  }
 0x10a   : > { %p10_p4 = scmp.ge.s32.totalorder %s13_s12, 4  }
 0x10c   :  { %12 = sbr.rel (!%p10_p4) target bundleno = 1 (0x1), region = 62 }

// kernel: bottleneck_forward.5
= control target key start
LH: loop header
LB: loop body
LE: loop exit
PB: predicated region body
PF: predicated region fallthrough
CT: control target
= control target key end

     0   :  { %vm135_vm0 = vcmask 1043456   ;;  %vm110_vm1 = vcmask 64512   ;;  %s936_s3 = inlined_call_operand.vmem [shape: bf16[8,128], index: 3, kind: input, shape index: {}]   ;;  %s937_s2 = inlined_call_operand.vmem [shape: bf16[128,128], index: 2, kind: input, shape index: {}]   ;;  %s938_s1 = inlined_call_operand.vmem [shape: bf16[128,8], index: 1, kind: input, shape index: {}]   ;;  %s939_s0 = inlined_call_operand.vmem [shape: bf16[128,128], index: 0, kind: input, shape index: {}]   ;;  %s940_s4 = inlined_call_operand.vmem [shape: f32[1,128], index: 4, kind: input, shape index: {}]   ;;  %s941_s5 = inlined_call_operand.vmem [shape: bf16[128,128], index: 5, kind: output, shape index: {}]  }
   0x1   :  { %v69_v0 = vld [vmem:[%s936_s3] sm:$0xf]  ;;  %v774_v4 = vld [vmem:[%s938_s1 + $0x8] sm:$0xff]   ;;  %v776_v6 = vld [vmem:[%s937_s2 + $0x10] sm:$0xff]  }
   0x2   :  { %771 = vmatprep.subr.msk.bf16.mxu0 %vm135_vm0, %v69_v0  ;;  %v137_v1 = vsel %vm135_vm0, %v69_v0, 0  ;;  %v772_v2 = vld [vmem:[%s937_s2] sm:$0xff]   ;;  %v775_v5 = vld [vmem:[%s937_s2 + $0x8] sm:$0xff]   ;;  %v777_v7 = vld [vmem:[%s938_s1 + $0x10] sm:$0xff]  }
   0x3   :  { %690 = vmatpush3.bf16.msra.mxu0 %v137_v1  ;;  %v773_v3 = vld [vmem:[%s938_s1] sm:$0xff]   ;;  %739 = vmatprep.subr.bf16.mxu1 %v772_v2  ;;  %v778_v8 = vld [vmem:[%s938_s1 + $0x18] sm:$0xff]   ;;  %v782_v12 = vld [vmem:[%s938_s1 + $0x28] sm:$0xff]  }
   0x4   :  { %707 = vmatprep.subr.bf16.mxu0 %v772_v2  ;;  %691 = vmatprep.mubr.msk.bf16.mxu0 %vm110_vm1, %v773_v3  ;;  %v779_v9 = vld [vmem:[%s937_s2 + $0x18] sm:$0xff]   ;;  %v781_v10 = vld [vmem:[%s938_s1 + $0x20] sm:$0xff]   ;;  %v783_v13 = vld [vmem:[%s937_s2 + $0x28] sm:$0xff]  }
   0x5   :  { %747 = vmatpush3.bf16.msra.mxu1 %v772_v2  ;;  %v780_v11 = vld [vmem:[%s937_s2 + $0x20] sm:$0xff]   ;;  %v785_v15 = vld [vmem:[%s938_s1 + $0x30] sm:$0xff]   ;;  %v786_v17 = vld [vmem:[%s938_s1 + $0x38] sm:$0xff]  }
   0x6   :  { %692 = vmatmul.mubr.msk.bf16.vlgmr.msra.gmra.mrb[0].mxu0 %vm110_vm1, %v774_v4  ;;  %740 = vmatprep.subr.bf16.mxu1 %v775_v5  ;;  %v788_v14 = vld [vmem:[%s939_s0 + $0x20] sm:$0xff]   ;;  %v784_v16 = vld [vmem:[%s937_s2 + $0x30] sm:$0xff]   ;;  %v787_v18 = vld [vmem:[%s937_s2 + $0x38] sm:$0xff]  }
   0x7   :  { %708 = vmatpush3.bf16.msra.mxu0 %v772_v2  ;;  %695 = vmatprep.mubr.msk.bf16.mxu0 %vm110_vm1, %v777_v7  ;;  %v790_v19 = vld [vmem:[%s939_s0] sm:$0xff]   ;;  %v789_v20 = vld [vmem:[%s939_s0 + $0x28] sm:$0xff]   ;;  %v792_v21 = vld [vmem:[%s939_s0 + $0x30] sm:$0xff]  }
   0x8   :  { %709 = vmatprep.subr.bf16.mxu0 %v775_v5  ;;  %731 = vmatprep.mubr.bf16.mxu1 %v788_v14  ;;  %v791_v22 = vld [vmem:[%s939_s0 + $0x8] sm:$0xff]   ;;  %v794_v23 = vld [vmem:[%s939_s0 + $0x10] sm:$0xff]   ;;  %v793_v24 = vld [vmem:[%s939_s0 + $0x38] sm:$0xff]  }
   0x9   :  { %748 = vmatpush3.bf16.msra.mxu1 %v775_v5  ;;  %v795_v25 = vld [vmem:[%s939_s0 + $0x18] sm:$0xff]   ;;  %v584_v35 = vld [vmem:[%s940_s4] ss:$0 sm:$0xff] }
   0xa   :  { %741 = vmatprep.subr.bf16.mxu1 %v776_v6 }
   0xb   :  { %710 = vmatpush3.bf16.msra.mxu0 %v775_v5 }
   0xc   :  { %711 = vmatprep.subr.bf16.mxu0 %v776_v6 }
   0xd   :  { %749 = vmatpush3.bf16.msra.mxu1 %v776_v6 }
   0xe   :  { %696 = vmatmul.mubr.msk.bf16.gmra.mrb[4].mxu0 %vm110_vm1, %v778_v8  ;;  %742 = vmatprep.subr.bf16.mxu1 %v779_v9 }
   0xf   :  { %712 = vmatpush3.bf16.msra.mxu0 %v776_v6  ;;  %699 = vmatprep.mubr.msk.bf16.mxu0 %vm110_vm1, %v781_v10 }
  0x10   :  { %713 = vmatprep.subr.bf16.mxu0 %v779_v9 }
  0x11   :  { %750 = vmatpush3.bf16.msra.mxu1 %v779_v9 }
  0x12   :  { %743 = vmatprep.subr.bf16.mxu1 %v780_v11 }
  0x13   :  { %714 = vmatpush3.bf16.msra.mxu0 %v779_v9 }
  0x14   :  { %715 = vmatprep.subr.bf16.mxu0 %v780_v11 }
  0x15   :  { %751 = vmatpush3.bf16.msra.mxu1 %v780_v11 }
  0x16   :  { %700 = vmatmul.mubr.msk.bf16.gmra.mrb[8].mxu0 %vm110_vm1, %v782_v12  ;;  %744 = vmatprep.subr.bf16.mxu1 %v783_v13 }
  0x17   :  { %716 = vmatpush3.bf16.msra.mxu0 %v780_v11  ;;  %703 = vmatprep.mubr.msk.bf16.mxu0 %vm110_vm1, %v785_v15 }
  0x18   :  { %717 = vmatprep.subr.bf16.mxu0 %v783_v13 }
  0x19   :  { %752 = vmatpush3.bf16.msra.mxu1 %v783_v13 }
  0x1a   :  { %745 = vmatprep.subr.bf16.mxu1 %v784_v16 }
  0x1b   :  { %718 = vmatpush3.bf16.msra.mxu0 %v783_v13 }
  0x1c   :  { %719 = vmatprep.subr.bf16.mxu0 %v784_v16 }
  0x1d   :  { %753 = vmatpush3.bf16.msra.mxu1 %v784_v16 }
  0x1e   :  { %704 = vmatmul.mubr.msk.bf16.gmra.mrb[12].mxu0 %vm110_vm1, %v786_v17  ;;  %746 = vmatprep.subr.bf16.mxu1 %v787_v18 }
  0x1f   :  { %720 = vmatpush3.bf16.msra.mxu0 %v784_v16  ;;  %723 = vmatprep.mubr.bf16.mxu0 %v790_v19 }
  0x20   :  { %721 = vmatprep.subr.bf16.mxu0 %v787_v18 }
  0x21   :  { %754 = vmatpush3.bf16.msra.mxu1 %v787_v18 }
  0x23   :  { %722 = vmatpush3.bf16.msra.mxu0 %v787_v18 }
  0x24   :  { %732 = vmatmul.mubr.bf16.vlgmr.msra.gmra.mrb[0].mxu1 %v789_v20 }
  0x25   :  { %735 = vmatprep.mubr.bf16.mxu1 %v792_v21 }
  0x26   :  { %724 = vmatmul.mubr.bf16.vlgmr.msra.gmra.mrb[0].mxu0 %v791_v22 }
  0x27   :  { %727 = vmatprep.mubr.bf16.mxu0 %v794_v23 }
  0x2c   :  { %736 = vmatmul.mubr.bf16.gmra.mrb[4].mxu1 %v793_v24 }
  0x2e   :  { %728 = vmatmul.mubr.bf16.gmra.mrb[4].mxu0 %v795_v25 }
  0xe9   :  { %v701_v26 = vpop.f32.mrb[8].mxu0 }
  0xea   :  { %v205_v27 = vpop.f32.mrb[9].mxu0 }
  0xeb   :  { %v702_v28 = vpop.f32.mrb[10].mxu0 }
  0xec   :  { %v208_v29 = vpop.f32.mrb[11].mxu0 }
  0xf1   :  { %v705_v30 = vpop.f32.mrb[12].mxu0 }
  0xf2   :  { %v221_v31 = vpop.f32.mrb[13].mxu0 }
  0xf3   :  { %v706_v32 = vpop.f32.mrb[14].mxu0 }
  0xf4   :  { %v224_v33 = vpop.f32.mrb[15].mxu0 }
  0xf7   :  { %v733_v34 = vpop.f32.mrb[0].mxu1 }
  0xf8   :  { %v407_v36 = vadd.f32 %v733_v34, %v701_v26  ;;  %v398_v37 = vpop.f32.mrb[1].mxu1 }
  0xf9   :  { %v399_v38 = vadd.f32 %v398_v37, %v205_v27  ;;  %v725_v39 = vpop.f32.mrb[0].mxu0  ;;  %v734_v40 = vpop.f32.mrb[2].mxu1 }
  0xfa   :  { %v446_v41 = vadd.f32 %v584_v35, %v407_v36  ;;  %v438_v42 = vadd.f32 %v725_v39, %v584_v35  ;;  %v410_v43 = vadd.f32 %v734_v40, %v702_v28  ;;  %v366_v44 = vpop.f32.mrb[1].mxu0  ;;  %v401_v45 = vpop.f32.mrb[3].mxu1 }
  0xfb   :  { %v444_v46 = vadd.f32 %v584_v35, %v399_v38  ;;  %v436_v47 = vadd.f32 %v584_v35, %v366_v44  ;;  %v402_v48 = vadd.f32 %v401_v45, %v208_v29  ;;  %v726_v49 = vpop.f32.mrb[2].mxu0 }
  0xfc   :  { %v447_v50 = vadd.f32 %v584_v35, %v410_v43  ;;  %v439_v51 = vadd.f32 %v726_v49, %v584_v35  ;;  %v369_v52 = vpop.f32.mrb[3].mxu0  ;;  %v462_v55 = vmax.f32 %v446_v41, 0.0  ;;  %v454_v56 = vmax.f32 %v438_v42, 0.0 }
  0xfd   :  { %v445_v53 = vadd.f32 %v584_v35, %v402_v48  ;;  %v437_v54 = vadd.f32 %v584_v35, %v369_v52  ;;  %v460_v59 = vmax.f32 %v444_v46, 0.0  ;;  %v452_v60 = vmax.f32 %v436_v47, 0.0 }
  0xfe   :  { %v463_v57 = vmax.f32 %v447_v50, 0.0  ;;  %v455_v58 = vmax.f32 %v439_v51, 0.0 }
  0xff   :  { %v461_v61 = vmax.f32 %v445_v53, 0.0  ;;  %v453_v62 = vmax.f32 %v437_v54, 0.0  ;;  %v737_v63 = vpop.f32.mrb[4].mxu1 }
 0x100   :  { %v645_v0 = vpack.c.bf16 %v463_v57, %v462_v55  ;;  %v625_v1 = vpack.c.bf16 %v455_v58, %v454_v56  ;;  %v423_v2 = vadd.f32 %v737_v63, %v705_v30  ;;  %v414_v3 = vpop.f32.mrb[5].mxu1 }
 0x101   :  { %v640_v4 = vpack.c.bf16 %v461_v61, %v460_v59  ;;  %v620_v5 = vpack.c.bf16 %v453_v62, %v452_v60  ;;  %v415_v6 = vadd.f32 %v414_v3, %v221_v31  ;;  %v729_v7 = vpop.f32.mrb[4].mxu0  ;;  %v738_v8 = vpop.f32.mrb[6].mxu1 }
 0x102   :  { %661 = vst [vmem:[%s941_s5 + $0x28] sm:$0xff] %v645_v0   ;;  %657 = vst [vmem:[%s941_s5 + $0x8] sm:$0xff] %v625_v1   ;;  %v450_v9 = vadd.f32 %v584_v35, %v423_v2  ;;  %v442_v10 = vadd.f32 %v729_v7, %v584_v35  ;;  %v426_v11 = vadd.f32 %v738_v8, %v706_v32  ;;  %v382_v12 = vpop.f32.mrb[5].mxu0  ;;  %v417_v13 = vpop.f32.mrb[7].mxu1 }
 0x103   :  { %660 = vst [vmem:[%s941_s5 + $0x20] sm:$0xff] %v640_v4   ;;  %621 = vst [vmem:[%s941_s5] sm:$0xff] %v620_v5   ;;  %v448_v14 = vadd.f32 %v584_v35, %v415_v6  ;;  %v440_v15 = vadd.f32 %v584_v35, %v382_v12  ;;  %v418_v16 = vadd.f32 %v417_v13, %v224_v33  ;;  %v730_v17 = vpop.f32.mrb[6].mxu0 }
 0x104   :  { %v451_v18 = vadd.f32 %v584_v35, %v426_v11  ;;  %v443_v19 = vadd.f32 %v730_v17, %v584_v35  ;;  %v385_v20 = vpop.f32.mrb[7].mxu0  ;;  %v466_v23 = vmax.f32 %v450_v9, 0.0  ;;  %v458_v24 = vmax.f32 %v442_v10, 0.0 }
 0x105   :  { %v449_v21 = vadd.f32 %v584_v35, %v418_v16  ;;  %v441_v22 = vadd.f32 %v584_v35, %v385_v20  ;;  %v464_v27 = vmax.f32 %v448_v14, 0.0  ;;  %v456_v28 = vmax.f32 %v440_v15, 0.0 }
 0x106   :  { %v467_v25 = vmax.f32 %v451_v18, 0.0  ;;  %v459_v26 = vmax.f32 %v443_v19, 0.0 }
 0x107   :  { %v465_v29 = vmax.f32 %v449_v21, 0.0  ;;  %v457_v30 = vmax.f32 %v441_v22, 0.0 }
 0x108   :  { %v655_v31 = vpack.c.bf16 %v467_v25, %v466_v23  ;;  %v635_v32 = vpack.c.bf16 %v459_v26, %v458_v24 }
 0x109   :  { %v650_v34 = vpack.c.bf16 %v465_v29, %v464_v27  ;;  %v630_v36 = vpack.c.bf16 %v457_v30, %v456_v28 }
 0x10a   :  { %663 = vst [vmem:[%s941_s5 + $0x38] sm:$0xff] %v655_v31   ;;  %659 = vst [vmem:[%s941_s5 + $0x18] sm:$0xff] %v635_v32  }
 0x10b   :  { %662 = vst [vmem:[%s941_s5 + $0x30] sm:$0xff] %v650_v34   ;;  %658 = vst [vmem:[%s941_s5 + $0x10] sm:$0xff] %v630_v36  }

// kernel: bottleneck_forward.4
= control target key start
LH: loop header
LB: loop body
LE: loop exit
PB: predicated region body
PF: predicated region fallthrough
CT: control target
= control target key end

     0   :  { %s3280_s12 = smov 0   ;;  %s3282_s13 = smov 0   ;;  %s3665_s0 = inlined_call_operand.vmem [shape: bf16[8,9,9,128], index: 0, kind: input, shape index: {}]   ;;  %s3666_s1 = inlined_call_operand.vmem [shape: bf16[9,128,128], index: 1, kind: input, shape index: {}]   ;;  %s3667_s2 = inlined_call_operand.vmem [shape: f32[1,128], index: 2, kind: input, shape index: {}]   ;;  %s3668_s3 = inlined_call_operand.vmem [shape: bf16[2,8,8,128], index: 3, kind: output, shape index: {}]  }
   0x1   :  { %s3284_s14 = smov 0  }
   0x2 LB: > { %s25_s15 = sadd.s32 1, %s3254_s13  ;;  %p2371_p0 = scmp.ge.s32.totalorder %s3258_s14, 1  ;;  %s3258_s14 = sphi %s3284_s14, %s13_s14   ;;  %s3254_s13 = sphi %s3282_s13, %s3672_s13   ;;  %s3250_s12 = sphi %s3280_s12, %s3671_s12  }
   0x3   : > { %p27_p1 = scmp.ge.s32.totalorder %s25_s15, 2  ;;  %p153_p2 = scmp.lt.s32.totalorder %s3258_s14, 3 }
   0x5   : > { %s3674_s15 = smov (%p27_p1, %s25_s15), 0  ;;  %p154_p3 = pnand %p2371_p0, %p153_p2 }
   0x6   : > { %v3140_v0 = vld [vmem:[%s3666_s1] sm:$0xff] (!%p154_p3)   ;;  %s2372_s18 = sshll.u32 (!%p154_p3), %s3250_s12, 2  ;;  %v3142_v2 = vld [vmem:[%s3666_s1 + $0x8] sm:$0xff] (!%p154_p3)   ;;  %v3144_v4 = vld [vmem:[%s3666_s1 + $0x10] sm:$0xff] (!%p154_p3)   ;;  %vm578_vm0 = vsmask.f32 (!%p154_p3), 3328 }
   0x7   : > { %157 = sbr.rel (%p154_p3) target bundleno = 392 (0x188), region = 32  ;;  %v3141_v1 = vld [vmem:[%s3666_s1 + $0x100] sm:$0xff] (!%p154_p3)   ;;  %p183_p4 = scmp.lt.s32.totalorder (!%p154_p3), %s2372_s18, 7  ;;  %2819 = vmatprep.subr.bf16.mxu1 (!%p154_p3), %v3140_v0  ;;  %v3143_v3 = vld [vmem:[%s3666_s1 + $0x108] sm:$0xff] (!%p154_p3)   ;;  %v3145_v5 = vld [vmem:[%s3666_s1 + $0x110] sm:$0xff] (!%p154_p3)  }
   0x8   : > { %2915 = vmatprep.subr.bf16.mxu0 (!%p154_p3), %v3141_v1  ;;  %2820 = vmatpush3.bf16.msra.mxu1 (!%p154_p3), %v3140_v0  ;;  %v3146_v6 = vld [vmem:[%s3666_s1 + $0x18] sm:$0xff] (!%p154_p3)   ;;  %v3148_v8 = vld [vmem:[%s3666_s1 + $0x20] sm:$0xff] (!%p154_p3)   ;;  %v3150_v10 = vld [vmem:[%s3666_s1 + $0x28] sm:$0xff] (!%p154_p3)   ;;  %vm579_vm1 = vsmask.f32 (!%p154_p3), 7440  ;;  %p190_p5 = scmp.lt.s32.totalorder (!%p154_p3), %s3250_s12, 1 }
   0x9   : > { %2916 = vmatpush3.bf16.msra.mxu0 (!%p154_p3), %v3141_v1  ;;  %2821 = vmatprep.subr.bf16.mxu1 (!%p154_p3), %v3142_v2  ;;  %v3147_v7 = vld [vmem:[%s3666_s1 + $0x118] sm:$0xff] (!%p154_p3)   ;;  %v3149_v9 = vld [vmem:[%s3666_s1 + $0x120] sm:$0xff] (!%p154_p3)   ;;  %v3151_v12 = vld [vmem:[%s3666_s1 + $0x128] sm:$0xff] (!%p154_p3)  }
   0xa   : > { %2917 = vmatprep.subr.bf16.mxu0 (!%p154_p3), %v3143_v3  ;;  %v3152_v14 = vld [vmem:[%s3666_s1 + $0x30] sm:$0xff] (!%p154_p3)   ;;  %v3154_v16 = vld [vmem:[%s3666_s1 + $0x38] sm:$0xff] (!%p154_p3)   ;;  %v3157_v18 = vld [vmem:[%s3666_s1 + $0x40] sm:$0xff] (!%p154_p3)  }
   0xb   : > { %v3153_v15 = vld [vmem:[%s3666_s1 + $0x130] sm:$0xff] (!%p154_p3)   ;;  %v3155_v17 = vld [vmem:[%s3666_s1 + $0x138] sm:$0xff] (!%p154_p3)   ;;  %v3159_v19 = vld [vmem:[%s3666_s1 + $0x140] sm:$0xff] (!%p154_p3)  }
   0xc   : > { %2822 = vmatpush3.bf16.msra.mxu1 (!%p154_p3), %v3142_v2  ;;  %v3162_v22 = vld [vmem:[%s3666_s1 + $0x48] sm:$0xff] (!%p154_p3)   ;;  %v3164_v26 = vld [vmem:[%s3666_s1 + $0x50] sm:$0xff] (!%p154_p3)   ;;  %v3166_v28 = vld [vmem:[%s3666_s1 + $0x58] sm:$0xff] (!%p154_p3)  }
   0xd   : > { %2918 = vmatpush3.bf16.msra.mxu0 (!%p154_p3), %v3143_v3  ;;  %2823 = vmatprep.subr.bf16.mxu1 (!%p154_p3), %v3144_v4  ;;  %v3163_v23 = vld [vmem:[%s3666_s1 + $0x148] sm:$0xff] (!%p154_p3)   ;;  %v3165_v27 = vld [vmem:[%s3666_s1 + $0x150] sm:$0xff] (!%p154_p3)   ;;  %v3167_v31 = vld [vmem:[%s3666_s1 + $0x158] sm:$0xff] (!%p154_p3)  }
   0xe   : > { %s3676_s18 = smov (!%p183_p4, %s2372_s18), 7  ;;  %2919 = vmatprep.subr.bf16.mxu0 %v3145_v5  ;;  %v3168_v38 = vld [vmem:[%s3666_s1 + $0x60] sm:$0xff]   ;;  %v3170_v47 = vld [vmem:[%s3666_s1 + $0x68] sm:$0xff]   ;;  %vm3405_vm2 = vmor %vm578_vm0, %vm579_vm1  ;;  %s3678_s12 = smov (!%p190_p5, %s3250_s12), 1 }
   0xf   : > { %s3115_s6 = smul.u32 72, %s3676_s18  ;;  %v3169_v43 = vld [vmem:[%s3666_s1 + $0x160] sm:$0xff]   ;;  %v3171_v50 = vld [vmem:[%s3666_s1 + $0x168] sm:$0xff]   ;;  %v3173_v2 = vld [vmem:[%s3666_s1 + $0x70] sm:$0xff]  }
  0x10   : > { %2824 = vmatpush3.bf16.msra.mxu1 %v3144_v4 }
  0x11   : > { %2920 = vmatpush3.bf16.msra.mxu0 %v3145_v5  ;;  %2825 = vmatprep.subr.bf16.mxu1 %v3146_v6  ;;  %s3334_s17 = scalar_lea.vmem %s3665_s0, %s3115_s6  ;;  %s2687_s6 = sshll.u32 %s3678_s12, 5 }
  0x12   : > { %2921 = vmatprep.subr.bf16.mxu0 %v3147_v7  ;;  %v3156_v11 = vld [vmem:[%s3334_s17] ss:$8 sps:$4 sm:$0xff]   ;;  %v3160_v20 = vld [vmem:[%s3334_s17 + $0x10] ss:$8 sps:$4 sm:$0xff]   ;;  %v2525_v34 = vld [vmem:[%s3334_s17 + $0x94] sm:$0x1]  ;;  %s197_s9 = scalar_lea.vmem %s3668_s3, %s2687_s6 }
  0x13   : > { %2835 = vmatprep.mubr.bf16.mxu1 %v3156_v11  ;;  %v3158_v13 = vld [vmem:[%s3334_s17 + $0xd8] ss:$8 sps:$4 sm:$0xff]   ;;  %v3161_v21 = vld [vmem:[%s3334_s17 + $0xe8] ss:$8 sps:$4 sm:$0xff]   ;;  %v2527_v39 = vld [vmem:[%s3334_s17 + $0x9c] sm:$0x1] }
  0x14   : > { %2826 = vmatpush3.bf16.msra.mxu1 %v3146_v6  ;;  %2931 = vmatprep.mubr.bf16.mxu0 %v3158_v13  ;;  %v3172_v24 = vld [vmem:[%s3334_s17 + $0x20] ss:$8 sps:$4 sm:$0xff]   ;;  %v3176_v29 = vld [vmem:[%s3334_s17 + $0x30] ss:$8 sps:$4 sm:$0xff]   ;;  %v1267_v40 = vshll.u32 %v2525_v34, 16  ;;  %v1281_v46 = vshll.u32 %v2527_v39, 16 }
  0x15   : > { %2922 = vmatpush3.bf16.msra.mxu0 %v3147_v7  ;;  %2827 = vmatprep.subr.bf16.mxu1 %v3148_v8  ;;  %v3174_v25 = vld [vmem:[%s3334_s17 + $0xf8] ss:$8 sps:$4 sm:$0xff]   ;;  %v3177_v30 = vld [vmem:[%s3334_s17 + $0x108] ss:$8 sps:$4 sm:$0xff]   ;;  %v2529_v57 = vld [vmem:[%s3334_s17 + $0xa4] sm:$0x1] }
  0x16   : > { %2923 = vmatprep.subr.bf16.mxu0 %v3149_v9  ;;  %v3180_v32 = vld [vmem:[%s3334_s17 + $0x48] ss:$8 sps:$4 sm:$0xff]   ;;  %v2526_v35 = vld [vmem:[%s3334_s17 + $0x98] sm:$0xf]  ;;  %v1269_v52 = vrot.slane %v1267_v40, 5  ;;  %v1283_v55 = vrot.slane %v1281_v46, 5 }
  0x17   : > { %v2524_v33 = vld [vmem:[%s3334_s17 + $0x90] sm:$0xf]  ;;  %v1272_v41 = vshrl.u32 %v2526_v35, 16  ;;  %v1275_v42 = vshll.u32 %v2526_v35, 16  ;;  %v2528_v56 = vld [vmem:[%s3334_s17 + $0xa0] sm:$0xf] }
  0x18   : > { %2828 = vmatpush3.bf16.msra.mxu1 %v3148_v8  ;;  %v1258_v36 = vshrl.u32 %v2524_v33, 16  ;;  %v1261_v37 = vshll.u32 %v2524_v33, 16  ;;  %v2530_v59 = vld [vmem:[%s3334_s17 + $0xa8] sm:$0xf]  ;;  %v2531_v60 = vld [vmem:[%s3334_s17 + $0xac] sm:$0x1] }
  0x19   : > { %2924 = vmatpush3.bf16.msra.mxu0 %v3149_v9  ;;  %2829 = vmatprep.subr.bf16.mxu1 %v3150_v10  ;;  %v1274_v48 = vrot.slane %v1272_v41, 4  ;;  %v1277_v49 = vrot.slane %v1275_v42, 5  ;;  %v1286_v61 = vshrl.u32 %v2528_v56, 16  ;;  %v1289_v63 = vshll.u32 %v2528_v56, 16  ;;  %v3175_v6 = vld [vmem:[%s3666_s1 + $0x170] sm:$0xff]  }
  0x1a   : > { %2925 = vmatprep.subr.bf16.mxu0 %v3151_v12  ;;  %v1260_v44 = vrot.slane %v1258_v36, 4  ;;  %v1263_v45 = vrot.slane %v1261_v37, 5  ;;  %v1295_v0 = vshll.u32 %v2529_v57, 16  ;;  %v1300_v1 = vshrl.u32 %v2530_v59, 16  ;;  %v3194_v37 = vld [vmem:[%s3334_s17 + $0x68] ss:$8 sps:$4 sm:$0xff]  }
  0x1b   : > { %v1278_v54 = vor.u32 %v1277_v49, %v1274_v48  ;;  %v1288_v4 = vrot.slane %v1286_v61, 4  ;;  %v1303_v5 = vshll.u32 %v2530_v59, 16  ;;  %v1291_v8 = vrot.slane %v1289_v63, 5  ;;  %v3197_v48 = vld [vmem:[%s3334_s17 + $0x78] ss:$8 sps:$4 sm:$0xff]  }
  0x1c   : > { %2830 = vmatpush3.bf16.msra.mxu1 %v3150_v10  ;;  %v1264_v51 = vor.u32 %v1263_v45, %v1260_v44  ;;  %v1302_v9 = vrot.slane %v1300_v1, 4  ;;  %v1309_v10 = vshll.u32 %v2531_v60, 16  ;;  %v2536_v49 = vld [vmem:[%s3334_s17 + $0xc0] sm:$0xf]  ;;  %v3188_v59 = vld [vmem:[%s3666_s1 + $0x98] sm:$0xff]  }
  0x1d   : > { %2926 = vmatpush3.bf16.msra.mxu0 %v3151_v12  ;;  %2831 = vmatprep.subr.bf16.mxu1 %v3152_v14  ;;  %v1279_v62 = vrot.slane %v1278_v54, 4  ;;  %v1297_v12 = vrot.slane %v1295_v0, 5  ;;  %v1305_v13 = vrot.slane %v1303_v5, 5  ;;  %v1342_v56 = vshrl.u32 %v2536_v49, 16 }
  0x1e   : > { %2927 = vmatprep.subr.bf16.mxu0 %v3153_v15  ;;  %v1265_v58 = vrot.slane %v1264_v51, 4  ;;  %v2538_v51 = vld [vmem:[%s3334_s17 + $0xc8] sm:$0xf]  ;;  %v1345_v57 = vshll.u32 %v2536_v49, 16 }
  0x1f   : > { %v1284_v7 = vsel %vm3405_vm2, %v1279_v62, %v1283_v55  ;;  %v2539_v55 = vld [vmem:[%s3334_s17 + $0xcc] sm:$0x1]  ;;  %v1356_v61 = vshrl.u32 %v2538_v51, 16  ;;  %v1359_v62 = vshll.u32 %v2538_v51, 16  ;;  %v1344_v1 = vrot.slane %v1342_v56, 4 }
  0x20   : > { %2832 = vmatpush3.bf16.msra.mxu1 %v3152_v14  ;;  %v1270_v3 = vsel %vm3405_vm2, %v1265_v58, %v1269_v52  ;;  %v3178_v14 = vld [vmem:[%s3666_s1 + $0x78] sm:$0xff]   ;;  %v3187_v52 = vld [vmem:[%s3666_s1 + $0x190] sm:$0xff]   ;;  %v1365_v63 = vshll.u32 %v2539_v55, 16 }
  0x21   : > { %2928 = vmatpush3.bf16.msra.mxu0 %v3153_v15  ;;  %2833 = vmatprep.subr.bf16.mxu1 %v3154_v16  ;;  %v2556_v11 = vcombine.low %v1270_v3, %v1284_v7  ;;  %v1292_v15 = vor.u32 %v1291_v8, %v1288_v4  ;;  %v3189_v4 = vld [vmem:[%s3666_s1 + $0x198] sm:$0xff]   ;;  %v1361_v7 = vrot.slane %v1359_v62, 5 }
  0x22   : > { %2929 = vmatprep.subr.bf16.mxu0 %v3155_v17  ;;  %v1367_v8 = vrot.slane %v1365_v63, 5 }
  0x24   : > { %2834 = vmatpush3.bf16.msra.mxu1 %v3154_v16  ;;  %v1306_v16 = vor.u32 %v1305_v13, %v1302_v9  ;;  %v3190_v13 = vld [vmem:[%s3666_s1 + $0xa0] sm:$0xff]  }
  0x25   : > { %2930 = vmatpush3.bf16.msra.mxu0 %v3155_v17  ;;  %2843 = vmatprep.subr.bf16.mxu1 %v3157_v18  ;;  %v1293_v17 = vrot.slane %v1292_v15, 4 }
  0x26   : > { %2939 = vmatprep.subr.bf16.mxu0 %v3159_v19 }
  0x27   : > { %2836 = vmatmul.mubr.bf16.vlgmr.msra.gmra.mrb[0].mxu1 %v3160_v20  ;;  %v1307_v20 = vrot.slane %v1306_v16, 4  ;;  %v564_v16 = vld [vmem:[%s3334_s17 + $0x8] sm:$0xf] }
  0x28   : > { %2844 = vmatpush3.bf16.msra.mxu1 %v3157_v18  ;;  %2932 = vmatmul.mubr.bf16.vlgmr.msra.gmra.mrb[0].mxu0 %v3161_v21  ;;  %v1311_v18 = vrot.slane %v1309_v10, 5  ;;  %v3181_v21 = vld [vmem:[%s3666_s1 + $0x80] sm:$0xff]  }
  0x29   : > { %2940 = vmatpush3.bf16.msra.mxu0 %v3159_v19  ;;  %2845 = vmatprep.subr.bf16.mxu1 %v3162_v22  ;;  %v3179_v19 = vld [vmem:[%s3666_s1 + $0x178] sm:$0xff]  }
  0x2a   : > { %2941 = vmatprep.subr.bf16.mxu0 %v3163_v23  ;;  %2839 = vmatprep.mubr.bf16.mxu1 %v3172_v24  ;;  %v3182_v24 = vld [vmem:[%s3666_s1 + $0x180] sm:$0xff]  }
  0x2b   : > { %2935 = vmatprep.mubr.bf16.mxu0 %v3174_v25  ;;  %v3183_v25 = vld [vmem:[%s3334_s17 + $0x58] ss:$8 sps:$4 sm:$0xff]  }
  0x2c   : > { %2846 = vmatpush3.bf16.msra.mxu1 %v3162_v22  ;;  %v1298_v22 = vsel %vm3405_vm2, %v1293_v17, %v1297_v12  ;;  %v563_v12 = vld [vmem:[%s3334_s17 + $0x4] sm:$0x1]  ;;  %v565_v17 = vld [vmem:[%s3334_s17 + $0xc] sm:$0x1] }
  0x2d   : > { %2942 = vmatpush3.bf16.msra.mxu0 %v3163_v23  ;;  %2847 = vmatprep.subr.bf16.mxu1 %v3164_v26  ;;  %v1312_v23 = vsel %vm3405_vm2, %v1307_v20, %v1311_v18 }
  0x2e   : > { %2943 = vmatprep.subr.bf16.mxu0 %v3165_v27 }
  0x2f   : > { %2840 = vmatmul.mubr.bf16.gmra.mrb[4].mxu1 %v3176_v29  ;;  %v3185_v29 = vld [vmem:[%s3666_s1 + $0x188] sm:$0xff]  }
  0x30   : > { %2848 = vmatpush3.bf16.msra.mxu1 %v3164_v26  ;;  %2936 = vmatmul.mubr.bf16.gmra.mrb[4].mxu0 %v3177_v30  ;;  %v3184_v26 = vld [vmem:[%s3666_s1 + $0x88] sm:$0xff]   ;;  %v2533_v30 = vld [vmem:[%s3334_s17 + $0xb4] sm:$0x1] }
  0x31   : > { %2944 = vmatpush3.bf16.msra.mxu0 %v3165_v27  ;;  %2849 = vmatprep.subr.bf16.mxu1 %v3166_v28  ;;  %v2532_v27 = vld [vmem:[%s3334_s17 + $0xb0] sm:$0xf]  ;;  %v1323_v35 = vshll.u32 %v2533_v30, 16 }
  0x32   : > { %2945 = vmatprep.subr.bf16.mxu0 %v3167_v31  ;;  %2859 = vmatprep.mubr.bf16.mxu1 %v3180_v32  ;;  %v2535_v32 = vld [vmem:[%s3334_s17 + $0xbc] sm:$0x1]  ;;  %v1314_v33 = vshrl.u32 %v2532_v27, 16  ;;  %v1317_v34 = vshll.u32 %v2532_v27, 16  ;;  %v605_v27 = vshll.u32 %v565_v17, 16 }
  0x33   : > { %2955 = vmatprep.mubr.bf16.mxu0 %v2556_v11  ;;  %v1337_v39 = vshll.u32 %v2535_v32, 16  ;;  %v1325_v44 = vrot.slane %v1323_v35, 5  ;;  %v562_v11 = vld [vmem:[%s3334_s17] sm:$0xf]  ;;  %v3192_v32 = vld [vmem:[%s3666_s1 + $0xa8] sm:$0xff]  }
  0x34   : > { %2850 = vmatpush3.bf16.msra.mxu1 %v3166_v28  ;;  %v2557_v28 = vcombine.low %v1298_v22, %v1312_v23  ;;  %v1316_v40 = vrot.slane %v1314_v33, 4  ;;  %v1319_v41 = vrot.slane %v1317_v34, 5  ;;  %v582_v18 = vshrl.u32 %v562_v11, 16  ;;  %v573_v17 = vld [vmem:[%s3334_s17 + $0x2c] sm:$0x1] }
  0x35   : > { %2946 = vmatpush3.bf16.msra.mxu0 %v3167_v31  ;;  %2851 = vmatprep.subr.bf16.mxu1 %v3168_v38  ;;  %v2534_v31 = vld [vmem:[%s3334_s17 + $0xb8] sm:$0xf]  ;;  %v1339_v46 = vrot.slane %v1337_v39, 5  ;;  %v596_v22 = vshrl.u32 %v564_v16, 16  ;;  %v599_v23 = vshll.u32 %v564_v16, 16 }
  0x36   : > { %2947 = vmatprep.subr.bf16.mxu0 %v3169_v43  ;;  %v1328_v36 = vshrl.u32 %v2534_v31, 16  ;;  %v572_v16 = vld [vmem:[%s3334_s17 + $0x28] sm:$0xf] }
  0x37   : > { %v598_v30 = vrot.slane %v596_v22, 4  ;;  %v652_v22 = vshrl.u32 %v572_v16, 16 }
  0x38   : > { %2852 = vmatpush3.bf16.msra.mxu1 %v3168_v38  ;;  %v1331_v38 = vshll.u32 %v2534_v31, 16  ;;  %v1330_v42 = vrot.slane %v1328_v36, 4  ;;  %v601_v31 = vrot.slane %v599_v23, 5  ;;  %v607_v36 = vrot.slane %v605_v27, 5 }
  0x39   : > { %2948 = vmatpush3.bf16.msra.mxu0 %v3169_v43  ;;  %2853 = vmatprep.subr.bf16.mxu1 %v3170_v47  ;;  %v3186_v43 = vld [vmem:[%s3666_s1 + $0x90] sm:$0xff]   ;;  %v655_v23 = vshll.u32 %v572_v16, 16  ;;  %v2641_v16 = vld [vmem:[%s3334_s17 + $0xc] sm:$0x1] }
  0x3a   : > { %2949 = vmatprep.subr.bf16.mxu0 %v3171_v50  ;;  %v1333_v45 = vrot.slane %v1331_v38, 5  ;;  %v3193_v38 = vld [vmem:[%s3666_s1 + $0x1a8] sm:$0xff]  }
  0x3c   : > { %2854 = vmatpush3.bf16.msra.mxu1 %v3170_v47  ;;  %v1320_v47 = vor.u32 %v1319_v41, %v1316_v40  ;;  %v1334_v54 = vor.u32 %v1333_v45, %v1330_v42  ;;  %v602_v40 = vor.u32 %v601_v31, %v598_v30  ;;  %v566_v41 = vld [vmem:[%s3334_s17 + $0x10] sm:$0xf]  ;;  %v657_v31 = vrot.slane %v655_v23, 5 }
  0x3d   : > { %2950 = vmatpush3.bf16.msra.mxu0 %v3171_v50  ;;  %2855 = vmatprep.subr.bf16.mxu1 %v3173_v2  ;;  %v2537_v50 = vld [vmem:[%s3334_s17 + $0xc4] sm:$0x1]  ;;  %v610_v45 = vshrl.u32 %v566_v41, 16  ;;  %v574_v30 = vld [vmem:[%s3334_s17 + $0x30] sm:$0xf] }
  0x3e   : > { %2951 = vmatprep.subr.bf16.mxu0 %v3175_v6  ;;  %v1351_v58 = vshll.u32 %v2537_v50, 16  ;;  %v1321_v60 = vrot.slane %v1320_v47, 4  ;;  %v1335_v0 = vrot.slane %v1334_v54, 4  ;;  %v569_v47 = vld [vmem:[%s3334_s17 + $0x1c] sm:$0x1] }
  0x40   : > { %2856 = vmatpush3.bf16.msra.mxu1 %v3173_v2  ;;  %v1347_v2 = vrot.slane %v1345_v57, 5  ;;  %v1353_v3 = vrot.slane %v1351_v58, 5  ;;  %v1326_v5 = vsel %vm3405_vm2, %v1321_v60, %v1325_v44  ;;  %v1340_v9 = vsel %vm3405_vm2, %v1335_v0, %v1339_v46  ;;  %v568_v44 = vld [vmem:[%s3334_s17 + $0x18] sm:$0xf]  ;;  %v3196_v60 = vld [vmem:[%s3666_s1 + $0x1b0] sm:$0xff]  }
  0x41   : > { %2952 = vmatpush3.bf16.msra.mxu0 %v3175_v6  ;;  %2857 = vmatprep.subr.bf16.mxu1 %v3178_v14  ;;  %v1358_v6 = vrot.slane %v1356_v61, 4  ;;  %v603_v46 = vrot.slane %v602_v40, 4  ;;  %v624_v50 = vshrl.u32 %v568_v44, 16  ;;  %v627_v54 = vshll.u32 %v568_v44, 16 }
  0x42   : > { %2953 = vmatprep.subr.bf16.mxu0 %v3179_v19  ;;  %v1348_v10 = vor.u32 %v1347_v2, %v1344_v1  ;;  %v633_v58 = vshll.u32 %v569_v47, 16 }
  0x43   : > { %v1362_v15 = vor.u32 %v1361_v7, %v1358_v6  ;;  %v608_v55 = vsel %vm3405_vm2, %v603_v46, %v607_v36  ;;  %v626_v57 = vrot.slane %v624_v50, 4  ;;  %v629_v63 = vrot.slane %v627_v54, 5  ;;  %v3199_v6 = vld [vmem:[%s3666_s1 + $0x1b8] sm:$0xff]   ;;  %v3200_v7 = vld [vmem:[%s3666_s1 + $0xc0] sm:$0xff]  }
  0x44   : > { %2858 = vmatpush3.bf16.msra.mxu1 %v3178_v14  ;;  %v2558_v14 = vcombine.low %v1326_v5, %v1340_v9  ;;  %v1349_v20 = vrot.slane %v1348_v10, 4  ;;  %v3202_v10 = vld [vmem:[%s3666_s1 + $0x1c0] sm:$0xff]   ;;  %v3208_v50 = vld [vmem:[%s3666_s1 + $0xd8] sm:$0xff]  }
  0x45   : > { %2954 = vmatpush3.bf16.msra.mxu0 %v3179_v19  ;;  %2867 = vmatprep.subr.bf16.mxu1 %v3181_v21  ;;  %v585_v19 = vshll.u32 %v562_v11, 16  ;;  %v630_v1 = vor.u32 %v629_v63, %v626_v57  ;;  %v3203_v11 = vld [vmem:[%s3334_s17 + $0x18] ss:$8 sps:$4 sm:$0xff]  }
  0x46   : > { %2963 = vmatprep.subr.bf16.mxu0 %v3182_v24 }
  0x47   : > { %2860 = vmatmul.mubr.bf16.vlgmr.msra.gmra.mrb[0].mxu1 %v3183_v25  ;;  %v584_v25 = vrot.slane %v582_v18, 4  ;;  %v631_v5 = vrot.slane %v630_v1, 4  ;;  %v3205_v18 = vld [vmem:[%s3666_s1 + $0x1c8] sm:$0xff]   ;;  %v3210_v1 = vld [vmem:[%s3666_s1 + $0xe0] sm:$0xff]  }
  0x48   : > { %2868 = vmatpush3.bf16.msra.mxu1 %v3181_v21  ;;  %2956 = vmatmul.mubr.bf16.vlgmr.msra.gmra.mrb[0].mxu0 %v2557_v28  ;;  %v591_v21 = vshll.u32 %v563_v12, 16  ;;  %v3191_v28 = vld [vmem:[%s3666_s1 + $0x1a0] sm:$0xff]  }
  0x49   : > { %2964 = vmatpush3.bf16.msra.mxu0 %v3182_v24  ;;  %2869 = vmatprep.subr.bf16.mxu1 %v3184_v26  ;;  %v1363_v24 = vrot.slane %v1362_v15, 4  ;;  %v570_v12 = vld [vmem:[%s3334_s17 + $0x20] sm:$0xf]  ;;  %v571_v15 = vld [vmem:[%s3334_s17 + $0x24] sm:$0x1] }
  0x4a   : > { %2965 = vmatprep.subr.bf16.mxu0 %v3185_v29  ;;  %2863 = vmatprep.mubr.bf16.mxu1 %v3194_v37  ;;  %v593_v35 = vrot.slane %v591_v21, 5  ;;  %v3201_v37 = vld [vmem:[%s3334_s17 + $0x8] ss:$8 sps:$4 sm:$0xff]   ;;  %v647_v21 = vshll.u32 %v571_v15, 16 }
  0x4b   : > { %2959 = vmatprep.mubr.bf16.mxu0 %v2558_v14  ;;  %v1368_v33 = vsel %vm3405_vm2, %v1363_v24, %v1367_v8  ;;  %v3204_v14 = vld [vmem:[%s3666_s1 + $0xc8] sm:$0xff]   ;;  %v661_v24 = vshll.u32 %v573_v17, 16  ;;  %v2642_v17 = vld [vmem:[%s3334_s17 + $0x10] sm:$0xf] }
  0x4c   : > { %2870 = vmatpush3.bf16.msra.mxu1 %v3184_v26  ;;  %v587_v26 = vrot.slane %v585_v19, 5  ;;  %v638_v19 = vshrl.u32 %v570_v12, 16  ;;  %v2640_v15 = vld [vmem:[%s3334_s17 + $0x8] sm:$0xf]  ;;  %v1952_v23 = vshll.u32 %v2642_v17, 16 }
  0x4d   : > { %2966 = vmatpush3.bf16.msra.mxu0 %v3185_v29  ;;  %2871 = vmatprep.subr.bf16.mxu1 %v3186_v43  ;;  %v1354_v29 = vsel %vm3405_vm2, %v1349_v20, %v1353_v3  ;;  %v635_v3 = vrot.slane %v633_v58, 5  ;;  %v641_v20 = vshll.u32 %v570_v12, 16  ;;  %v3216_v58 = vld [vmem:[%s3334_s17 + $0x38] ss:$8 sps:$4 sm:$0xff]  }
  0x4e   : > { %2967 = vmatprep.subr.bf16.mxu0 %v3187_v52  ;;  %v588_v34 = vor.u32 %v587_v26, %v584_v25  ;;  %v2559_v39 = vcombine.low %v1354_v29, %v1368_v33  ;;  %v3214_v25 = vld [vmem:[%s3334_s17 + $0x28] ss:$8 sps:$4 sm:$0xff]   ;;  %v640_v26 = vrot.slane %v638_v19, 4  ;;  %v654_v29 = vrot.slane %v652_v22, 4  ;;  %v575_v33 = vld [vmem:[%s3334_s17 + $0x34] sm:$0x1] }
  0x4f   : > { %2864 = vmatmul.mubr.bf16.gmra.mrb[4].mxu1 %v3197_v48  ;;  %v613_v48 = vshll.u32 %v566_v41, 16  ;;  %v636_v9 = vsel %vm3405_vm2, %v631_v5, %v635_v3  ;;  %v643_v27 = vrot.slane %v641_v20, 5  ;;  %v675_v40 = vshll.u32 %v575_v33, 16  ;;  %v3207_v41 = vld [vmem:[%s3666_s1 + $0x1d0] sm:$0xff]   ;;  %v3211_v5 = vld [vmem:[%s3666_s1 + $0x1e0] sm:$0xff]   ;;  %v3218_v12 = vld [vmem:[%s3666_s1 + $0xf8] sm:$0xff]  }
  0x50   : > { %2872 = vmatpush3.bf16.msra.mxu1 %v3186_v43  ;;  %v589_v42 = vrot.slane %v588_v34, 4  ;;  %v567_v43 = vld [vmem:[%s3334_s17 + $0x14] sm:$0x1]  ;;  %2960 = vmatmul.mubr.bf16.gmra.mrb[4].mxu0 %v2559_v39  ;;  %v576_v34 = vld [vmem:[%s3334_s17 + $0x38] sm:$0xf]  ;;  %v669_v39 = vshll.u32 %v574_v30, 16 }
  0x51   : > { %2968 = vmatpush3.bf16.msra.mxu0 %v3187_v52  ;;  %2873 = vmatprep.subr.bf16.mxu1 %v3188_v59  ;;  %v619_v49 = vshll.u32 %v567_v43, 16  ;;  %v612_v52 = vrot.slane %v610_v45, 4  ;;  %v615_v56 = vrot.slane %v613_v48, 5  ;;  %v644_v36 = vor.u32 %v643_v27, %v640_v26  ;;  %v2651_v33 = vld [vmem:[%s3334_s17 + $0x34] sm:$0x1] }
  0x52   : > { %2969 = vmatprep.subr.bf16.mxu0 %v3189_v4  ;;  %v594_v51 = vsel %vm3405_vm2, %v589_v42, %v593_v35  ;;  %2979 = vmatprep.mubr.bf16.mxu0 %v3201_v37  ;;  %v3206_v35 = vld [vmem:[%s3666_s1 + $0xd0] sm:$0xff]   ;;  %v577_v37 = vld [vmem:[%s3334_s17 + $0x3c] sm:$0x1]  ;;  %v658_v42 = vor.u32 %v657_v31, %v654_v29  ;;  %v680_v43 = vshrl.u32 %v576_v34, 16  ;;  %v683_v44 = vshll.u32 %v576_v34, 16 }
  0x53   : > { %v2440_v61 = vcombine.low %v594_v51, %v608_v55  ;;  %v621_v62 = vrot.slane %v619_v49, 5  ;;  %v616_v0 = vor.u32 %v615_v56, %v612_v52  ;;  %v689_v45 = vshll.u32 %v577_v37, 16  ;;  %v2650_v29 = vld [vmem:[%s3334_s17 + $0x30] sm:$0xf]  ;;  %v3223_v34 = vld [vmem:[%s3334_s17 + $0x60] ss:$8 sps:$4 sm:$0xff]  }
  0x54   : > { %2874 = vmatpush3.bf16.msra.mxu1 %v3188_v59  ;;  %v3195_v59 = vld [vmem:[%s3666_s1 + $0xb0] sm:$0xff]   ;;  %v645_v46 = vrot.slane %v644_v36, 4  ;;  %v671_v48 = vrot.slane %v669_v39, 5  ;;  %v677_v49 = vrot.slane %v675_v40, 5  ;;  %v659_v51 = vrot.slane %v658_v42, 4  ;;  %v3225_v39 = vld [vmem:[%s3666_s1 + $0x208] sm:$0xff]  }
  0x55   : > { %2970 = vmatpush3.bf16.msra.mxu0 %v3189_v4  ;;  %2875 = vmatprep.subr.bf16.mxu1 %v3190_v13  ;;  %v617_v2 = vrot.slane %v616_v0, 4  ;;  %v3198_v4 = vld [vmem:[%s3666_s1 + $0xb8] sm:$0xff]   ;;  %v682_v52 = vrot.slane %v680_v43, 4  ;;  %v685_v54 = vrot.slane %v683_v44, 5  ;;  %v691_v55 = vrot.slane %v689_v45, 5 }
  0x56   : > { %2971 = vmatprep.subr.bf16.mxu0 %v3191_v28  ;;  %2883 = vmatprep.mubr.bf16.mxu1 %v2440_v61  ;;  %v3209_v61 = vld [vmem:[%s3666_s1 + $0x1d8] sm:$0xff]   ;;  %v1935_v19 = vshrl.u32 %v2640_v15, 16  ;;  %v1938_v20 = vshll.u32 %v2640_v15, 16  ;;  %v1949_v22 = vshrl.u32 %v2642_v17, 16  ;;  %v2008_v42 = vshll.u32 %v2650_v29, 16  ;;  %v3232_v15 = vld [vmem:[%s3666_s1 + $0x220] sm:$0xff]  }
  0x57   : > { %v622_v8 = vsel %vm3405_vm2, %v617_v2, %v621_v62  ;;  %v2014_v43 = vshll.u32 %v2651_v33, 16  ;;  %v3226_v44 = vld [vmem:[%s3334_s17 + $0xb0] ss:$8 sps:$4 sm:$0xff]  }
  0x58   : > { %2876 = vmatpush3.bf16.msra.mxu1 %v3190_v13  ;;  %v2441_v13 = vcombine.low %v622_v8, %v636_v9  ;;  %v3212_v8 = vld [vmem:[%s3666_s1 + $0xe8] sm:$0xff]   ;;  %v1937_v26 = vrot.slane %v1935_v19, 4  ;;  %v1940_v27 = vrot.slane %v1938_v20, 5  ;;  %v1951_v31 = vrot.slane %v1949_v22, 4 }
  0x59   : > { %2972 = vmatpush3.bf16.msra.mxu0 %v3191_v28  ;;  %2877 = vmatprep.subr.bf16.mxu1 %v3192_v32  ;;  %v649_v28 = vrot.slane %v647_v21, 5  ;;  %v3213_v9 = vld [vmem:[%s3666_s1 + $0x1e8] sm:$0xff]   ;;  %v1944_v21 = vshll.u32 %v2641_v16, 16 }
  0x5a   : > { %2973 = vmatprep.subr.bf16.mxu0 %v3193_v38  ;;  %v3233_v20 = vld [vmem:[%s3666_s1 + $0x228] sm:$0xff]  }
  0x5b   : > { %v650_v56 = vsel %vm3405_vm2, %v645_v46, %v649_v28  ;;  %v2649_v28 = vld [vmem:[%s3334_s17 + $0x2c] sm:$0x1]  ;;  %v1946_v45 = vrot.slane %v1944_v21, 5  ;;  %v2653_v21 = vld [vmem:[%s3334_s17 + $0x3c] sm:$0x1] }
  0x5c   : > { %2878 = vmatpush3.bf16.msra.mxu1 %v3192_v32  ;;  %v663_v32 = vrot.slane %v661_v24, 5 }
  0x5d   : > { %2974 = vmatpush3.bf16.msra.mxu0 %v3193_v38  ;;  %2879 = vmatprep.subr.bf16.mxu1 %v3195_v59  ;;  %v666_v38 = vshrl.u32 %v574_v30, 16  ;;  %v3222_v30 = vld [vmem:[%s3334_s17 + $0xa0] ss:$8 sps:$4 sm:$0xff]  }
  0x5e   : > { %2975 = vmatprep.subr.bf16.mxu0 %v3196_v60 }
  0x5f   : > { %v668_v47 = vrot.slane %v666_v38, 4  ;;  %v2000_v38 = vshll.u32 %v2649_v28, 16 }
  0x60   : > { %2880 = vmatpush3.bf16.msra.mxu1 %v3195_v59  ;;  %v664_v59 = vsel %vm3405_vm2, %v659_v51, %v663_v32  ;;  %v1954_v32 = vrot.slane %v1952_v23, 5 }
  0x61   : > { %2976 = vmatpush3.bf16.msra.mxu0 %v3196_v60  ;;  %2881 = vmatprep.subr.bf16.mxu1 %v3198_v4  ;;  %v672_v57 = vor.u32 %v671_v48, %v668_v47  ;;  %v686_v60 = vor.u32 %v685_v54, %v682_v52  ;;  %v2442_v62 = vcombine.low %v650_v56, %v664_v59  ;;  %v2010_v54 = vrot.slane %v2008_v42, 5 }
  0x62   : > { %2977 = vmatprep.subr.bf16.mxu0 %v3199_v6  ;;  %v1955_v40 = vor.u32 %v1954_v32, %v1951_v31  ;;  %v2002_v56 = vrot.slane %v2000_v38, 5  ;;  %v2016_v59 = vrot.slane %v2014_v43, 5  ;;  %v2645_v31 = vld [vmem:[%s3334_s17 + $0x1c] sm:$0x1]  ;;  %v2647_v32 = vld [vmem:[%s3334_s17 + $0x24] sm:$0x1] }
  0x63   : > { %v673_v63 = vrot.slane %v672_v57, 4  ;;  %v687_v0 = vrot.slane %v686_v60, 4  ;;  %v3230_v57 = vld [vmem:[%s3666_s1 + $0x210] sm:$0xff]  }
  0x64   : > { %2882 = vmatpush3.bf16.msra.mxu1 %v3198_v4  ;;  %v3221_v4 = vld [vmem:[%s3334_s17 + $0x50] ss:$8 sps:$4 sm:$0xff]   ;;  %v1956_v51 = vrot.slane %v1955_v40, 4 }
  0x65   : > { %2978 = vmatpush3.bf16.msra.mxu0 %v3199_v6  ;;  %2891 = vmatprep.subr.bf16.mxu1 %v3200_v7  ;;  %v678_v2 = vsel %vm3405_vm2, %v673_v63, %v677_v49  ;;  %v692_v3 = vsel %vm3405_vm2, %v687_v0, %v691_v55  ;;  %v3227_v49 = vld [vmem:[%s3334_s17 + $0x70] ss:$8 sps:$4 sm:$0xff]  }
  0x66   : > { %2987 = vmatprep.subr.bf16.mxu0 %v3202_v10  ;;  %v2443_v6 = vcombine.low %v678_v2, %v692_v3  ;;  %v3231_v3 = vld [vmem:[%s3666_s1 + $0x218] sm:$0xff]  }
  0x67   : > { %2884 = vmatmul.mubr.bf16.vlgmr.msra.gmra.mrb[0].mxu1 %v2441_v13  ;;  %v3219_v13 = vld [vmem:[%s3666_s1 + $0x1f8] sm:$0xff]  }
  0x68   : > { %2892 = vmatpush3.bf16.msra.mxu1 %v3200_v7  ;;  %2980 = vmatmul.mubr.bf16.vlgmr.msra.gmra.mrb[0].mxu0 %v3203_v11  ;;  %v3220_v7 = vld [vmem:[%s3334_s17 + $0x90] ss:$8 sps:$4 sm:$0xff]  }
  0x69   : > { %2988 = vmatpush3.bf16.msra.mxu0 %v3202_v10  ;;  %2893 = vmatprep.subr.bf16.mxu1 %v3204_v14  ;;  %v3215_v10 = vld [vmem:[%s3666_s1 + $0xf0] sm:$0xff]  }
  0x6a   : > { %2989 = vmatprep.subr.bf16.mxu0 %v3205_v18  ;;  %2983 = vmatprep.mubr.bf16.mxu0 %v3214_v25  ;;  %v3217_v11 = vld [vmem:[%s3666_s1 + $0x1f0] sm:$0xff]   ;;  %v2648_v25 = vld [vmem:[%s3334_s17 + $0x28] sm:$0xf] }
  0x6b   : > { %2887 = vmatprep.mubr.bf16.mxu1 %v2442_v62  ;;  %v1991_v36 = vshrl.u32 %v2648_v25, 16  ;;  %v1994_v37 = vshll.u32 %v2648_v25, 16 }
  0x6c   : > { %2894 = vmatpush3.bf16.msra.mxu1 %v3204_v14  ;;  %v3224_v14 = vld [vmem:[%s3666_s1 + $0x200] sm:$0xff]  }
  0x6d   : > { %2990 = vmatpush3.bf16.msra.mxu0 %v3205_v18  ;;  %2895 = vmatprep.subr.bf16.mxu1 %v3206_v35  ;;  %v2643_v18 = vld [vmem:[%s3334_s17 + $0x14] sm:$0x1]  ;;  %v1993_v47 = vrot.slane %v1991_v36, 4  ;;  %v1996_v48 = vrot.slane %v1994_v37, 5 }
  0x6e   : > { %2991 = vmatprep.subr.bf16.mxu0 %v3207_v41  ;;  %v1958_v24 = vshll.u32 %v2643_v18, 16  ;;  %v3234_v37 = vld [vmem:[%s3666_s1 + $0x230] sm:$0xff]  }
  0x6f   : > { %2888 = vmatmul.mubr.bf16.gmra.mrb[4].mxu1 %v2443_v6  ;;  %v1997_v55 = vor.u32 %v1996_v48, %v1993_v47  ;;  %v2654_v6 = vld [vmem:[%s3334_s17 + $0x40] sm:$0xf] }
  0x70   : > { %2896 = vmatpush3.bf16.msra.mxu1 %v3206_v35  ;;  %2984 = vmatmul.mubr.bf16.gmra.mrb[4].mxu0 %v3216_v58  ;;  %v1941_v35 = vor.u32 %v1940_v27, %v1937_v26  ;;  %v1960_v46 = vrot.slane %v1958_v24, 5 }
  0x71   : > { %2992 = vmatpush3.bf16.msra.mxu0 %v3207_v41  ;;  %2897 = vmatprep.subr.bf16.mxu1 %v3208_v50  ;;  %v2005_v41 = vshrl.u32 %v2650_v29, 16  ;;  %v1998_v60 = vrot.slane %v1997_v55, 4 }
  0x72   : > { %2993 = vmatprep.subr.bf16.mxu0 %v3209_v61  ;;  %3003 = vmatprep.mubr.bf16.mxu0 %v3221_v4  ;;  %v1961_v63 = vsel %vm3405_vm2, %v1956_v51, %v1960_v46  ;;  %v3235_v46 = vld [vmem:[%s3666_s1 + $0x238] sm:$0xff]  }
  0x73   : > { %2907 = vmatprep.mubr.bf16.mxu1 %v3220_v7  ;;  %v2007_v52 = vrot.slane %v2005_v41, 4  ;;  %v2003_v2 = vsel %vm3405_vm2, %v1998_v60, %v2002_v56  ;;  %v1986_v41 = vshll.u32 %v2647_v32, 16 }
  0x74   : > { %2898 = vmatpush3.bf16.msra.mxu1 %v3208_v50  ;;  %v1942_v50 = vrot.slane %v1941_v35, 4 }
  0x75   : > { %2994 = vmatpush3.bf16.msra.mxu0 %v3209_v61  ;;  %2899 = vmatprep.subr.bf16.mxu1 %v3210_v1  ;;  %v2011_v58 = vor.u32 %v2010_v54, %v2007_v52  ;;  %v3228_v61 = vld [vmem:[%s3334_s17 + $0xc0] ss:$8 sps:$4 sm:$0xff]  }
  0x76   : > { %2995 = vmatprep.subr.bf16.mxu0 %v3211_v5  ;;  %v1947_v62 = vsel %vm3405_vm2, %v1942_v50, %v1946_v45  ;;  %v1988_v50 = vrot.slane %v1986_v41, 5 }
  0x77   : > { %v2012_v0 = vrot.slane %v2011_v58, 4  ;;  %v2672_v7 = vcombine.low %v1947_v62, %v1961_v63 }
  0x78   : > { %2900 = vmatpush3.bf16.msra.mxu1 %v3210_v1  ;;  %v3229_v1 = vld [vmem:[%s3334_s17 + $0x80] ss:$8 sps:$4 sm:$0xff]  }
  0x79   : > { %2996 = vmatpush3.bf16.msra.mxu0 %v3211_v5  ;;  %2901 = vmatprep.subr.bf16.mxu1 %v3212_v8  ;;  %v2017_v4 = vsel %vm3405_vm2, %v2012_v0, %v2016_v59  ;;  %v2652_v5 = vld [vmem:[%s3334_s17 + $0x38] sm:$0xf] }
  0x7a   : > { %2997 = vmatprep.subr.bf16.mxu0 %v3213_v9 }
  0x7c   : > { %2902 = vmatpush3.bf16.msra.mxu1 %v3212_v8  ;;  %v2644_v8 = vld [vmem:[%s3334_s17 + $0x18] sm:$0xf] }
  0x7d   : > { %2998 = vmatpush3.bf16.msra.mxu0 %v3213_v9  ;;  %2903 = vmatprep.subr.bf16.mxu1 %v3215_v10  ;;  %v2646_v9 = vld [vmem:[%s3334_s17 + $0x20] sm:$0xf]  ;;  %v1963_v16 = vshrl.u32 %v2644_v8, 16  ;;  %v1966_v17 = vshll.u32 %v2644_v8, 16 }
  0x7e   : > { %2999 = vmatprep.subr.bf16.mxu0 %v3217_v11  ;;  %v1977_v18 = vshrl.u32 %v2646_v9, 16  ;;  %v1980_v19 = vshll.u32 %v2646_v9, 16  ;;  %v2684_v9 = vld [vmem:[%s3667_s2] ss:$0 sm:$0xff] }
  0x7f   : > { %v1965_v26 = vrot.slane %v1963_v16, 4  ;;  %v1968_v27 = vrot.slane %v1966_v17, 5 }
  0x80   : > { %2904 = vmatpush3.bf16.msra.mxu1 %v3215_v10  ;;  %v2674_v10 = vcombine.low %v2003_v2, %v2017_v4  ;;  %v1979_v28 = vrot.slane %v1977_v18, 4  ;;  %v1982_v29 = vrot.slane %v1980_v19, 5 }
  0x81   : > { %3000 = vmatpush3.bf16.msra.mxu0 %v3217_v11  ;;  %2905 = vmatprep.subr.bf16.mxu1 %v3218_v12  ;;  %v2019_v11 = vshrl.u32 %v2652_v5, 16  ;;  %v1969_v38 = vor.u32 %v1968_v27, %v1965_v26 }
  0x82   : > { %3001 = vmatprep.subr.bf16.mxu0 %v3219_v13  ;;  %v1983_v40 = vor.u32 %v1982_v29, %v1979_v28 }
  0x83   : > { %v2021_v22 = vrot.slane %v2019_v11, 4  ;;  %v1970_v47 = vrot.slane %v1969_v38, 4 }
  0x84   : > { %2906 = vmatpush3.bf16.msra.mxu1 %v3218_v12  ;;  %v2022_v12 = vshll.u32 %v2652_v5, 16 }
  0x85   : > { %3002 = vmatpush3.bf16.msra.mxu0 %v3219_v13  ;;  %3035 = vmatprep.subr.bf16.mxu1 %v3224_v14  ;;  %v2033_v13 = vshrl.u32 %v2654_v6, 16 }
  0x86   : > { %3011 = vmatprep.subr.bf16.mxu0 %v3224_v14  ;;  %v2024_v23 = vrot.slane %v2022_v12, 5 }
  0x87   : > { %2908 = vmatmul.mubr.bf16.vlgmr.msra.gmra.mrb[0].mxu1 %v3222_v30  ;;  %v2035_v24 = vrot.slane %v2033_v13, 4  ;;  %v2655_v30 = vld [vmem:[%s3334_s17 + $0x44] sm:$0x1] }
  0x88   : > { %3004 = vmatmul.mubr.bf16.vlgmr.msra.gmra.mrb[0].mxu0 %v3223_v34  ;;  %3043 = vmatpush3.bf16.msra.mxu1 %v3224_v14  ;;  %v2025_v33 = vor.u32 %v2024_v23, %v2021_v22  ;;  %v2028_v34 = vshll.u32 %v2653_v21, 16  ;;  %v2042_v36 = vshll.u32 %v2655_v30, 16 }
  0x89   : > { %3012 = vmatpush3.bf16.msra.mxu0 %v3224_v14  ;;  %3036 = vmatprep.subr.bf16.mxu1 %v3225_v39  ;;  %v2036_v14 = vshll.u32 %v2654_v6, 16 }
  0x8a   : > { %3013 = vmatprep.subr.bf16.mxu0 %v3225_v39  ;;  %2911 = vmatprep.mubr.bf16.mxu1 %v3226_v44  ;;  %v2026_v42 = vrot.slane %v2025_v33, 4  ;;  %v2030_v43 = vrot.slane %v2028_v34, 5  ;;  %v2044_v45 = vrot.slane %v2042_v36, 5 }
  0x8b   : > { %3007 = vmatprep.mubr.bf16.mxu0 %v3227_v49  ;;  %v2038_v25 = vrot.slane %v2036_v14, 5  ;;  %v1984_v49 = vrot.slane %v1983_v40, 4 }
  0x8c   : > { %3044 = vmatpush3.bf16.msra.mxu1 %v3225_v39  ;;  %v2031_v51 = vsel %vm3405_vm2, %v2026_v42, %v2030_v43 }
  0x8d   : > { %3014 = vmatpush3.bf16.msra.mxu0 %v3225_v39  ;;  %3037 = vmatprep.subr.bf16.mxu1 %v3230_v57  ;;  %v2039_v35 = vor.u32 %v2038_v25, %v2035_v24  ;;  %v1972_v39 = vshll.u32 %v2645_v31, 16  ;;  %v1989_v55 = vsel %vm3405_vm2, %v1984_v49, %v1988_v50 }
  0x8e   : > { %3015 = vmatprep.subr.bf16.mxu0 %v3230_v57 }
  0x8f   : > { %2912 = vmatmul.mubr.bf16.gmra.mrb[4].mxu1 %v3228_v61  ;;  %v2040_v44 = vrot.slane %v2039_v35, 4  ;;  %v1974_v48 = vrot.slane %v1972_v39, 5 }
  0x90   : > { %3008 = vmatmul.mubr.bf16.gmra.mrb[4].mxu0 %v3229_v1  ;;  %3045 = vmatpush3.bf16.msra.mxu1 %v3230_v57 }
  0x91   : > { %3016 = vmatpush3.bf16.msra.mxu0 %v3230_v57  ;;  %3038 = vmatprep.subr.bf16.mxu1 %v3231_v3  ;;  %v2045_v52 = vsel %vm3405_vm2, %v2040_v44, %v2044_v45  ;;  %v1975_v54 = vsel %vm3405_vm2, %v1970_v47, %v1974_v48 }
  0x92   : > { %3017 = vmatprep.subr.bf16.mxu0 %v3231_v3  ;;  %3027 = vmatprep.mubr.bf16.mxu0 %v2672_v7  ;;  %v2675_v56 = vcombine.low %v2031_v51, %v2045_v52  ;;  %v2673_v57 = vcombine.low %v1975_v54, %v1989_v55 }
  0x93   : > { %3031 = vmatprep.mubr.bf16.mxu1 %v2674_v10 }
  0x94   : > { %3046 = vmatpush3.bf16.msra.mxu1 %v3231_v3 }
  0x95   : > { %3018 = vmatpush3.bf16.msra.mxu0 %v3231_v3  ;;  %3039 = vmatprep.subr.bf16.mxu1 %v3232_v15 }
  0x96   : > { %3019 = vmatprep.subr.bf16.mxu0 %v3232_v15 }
  0x98   : > { %3047 = vmatpush3.bf16.msra.mxu1 %v3232_v15 }
  0x99   : > { %3020 = vmatpush3.bf16.msra.mxu0 %v3232_v15  ;;  %3040 = vmatprep.subr.bf16.mxu1 %v3233_v20 }
  0x9a   : > { %3021 = vmatprep.subr.bf16.mxu0 %v3233_v20 }
  0x9c   : > { %3048 = vmatpush3.bf16.msra.mxu1 %v3233_v20 }
  0x9d   : > { %3022 = vmatpush3.bf16.msra.mxu0 %v3233_v20  ;;  %3041 = vmatprep.subr.bf16.mxu1 %v3234_v37 }
  0x9e   : > { %3023 = vmatprep.subr.bf16.mxu0 %v3234_v37 }
  0xa0   : > { %3049 = vmatpush3.bf16.msra.mxu1 %v3234_v37 }
  0xa1   : > { %3024 = vmatpush3.bf16.msra.mxu0 %v3234_v37  ;;  %3042 = vmatprep.subr.bf16.mxu1 %v3235_v46 }
  0xa2   : > { %3025 = vmatprep.subr.bf16.mxu0 %v3235_v46 }
  0xa4   : > { %3050 = vmatpush3.bf16.msra.mxu1 %v3235_v46 }
  0xa5   : > { %3026 = vmatpush3.bf16.msra.mxu0 %v3235_v46 }
  0xa7   : > { %3032 = vmatmul.mubr.bf16.vlgmr.msra.gmra.mrb[8].mxu1 %v2675_v56 }
  0xa8   : > { %3028 = vmatmul.mubr.bf16.vlgmr.msra.gmra.mrb[0].mxu0 %v2673_v57 }
 0x15a   : > { %v2909_v58 = vpop.f32.mrb[0].mxu1 }
 0x15b   : > { %v997_v59 = vpop.f32.mrb[1].mxu1 }
 0x15c   : > { %v2910_v60 = vpop.f32.mrb[2].mxu1 }
 0x15d   : > { %v1000_v61 = vpop.f32.mrb[3].mxu1 }
 0x162   : > { %v2913_v62 = vpop.f32.mrb[4].mxu1 }
 0x163   : > { %v3009_v63 = vpop.f32.mrb[4].mxu0  ;;  %v1013_v0 = vpop.f32.mrb[5].mxu1 }
 0x164   : > { %v3055_v1 = vadd.f32 %v3009_v63, %v2913_v62  ;;  %v1879_v2 = vpop.f32.mrb[5].mxu0  ;;  %v2914_v53 = vpop.f32.mrb[6].mxu1 }
 0x165   : > { %v3057_v3 = vadd.f32 %v1879_v2, %v1013_v0  ;;  %v3010_v4 = vpop.f32.mrb[6].mxu0  ;;  %v1016_v5 = vpop.f32.mrb[7].mxu1 }
 0x166   : > { %v3059_v6 = vadd.f32 %v3010_v4, %v2914_v53  ;;  %v1882_v7 = vpop.f32.mrb[7].mxu0 }
 0x167   : > { %v3061_v8 = vadd.f32 %v1882_v7, %v1016_v5 }
 0x17a   : > { %v3033_v10 = vpop.f32.mrb[8].mxu1 }
 0x17b   : > { %v3029_v11 = vpop.f32.mrb[0].mxu0  ;;  %v3056_v12 = vadd.f32 %v3055_v1, %v3033_v10  ;;  %v2177_v13 = vpop.f32.mrb[9].mxu1 }
 0x17c   : > { %v3051_v14 = vadd.f32 %v3029_v11, %v2909_v58  ;;  %v2161_v15 = vpop.f32.mrb[1].mxu0  ;;  %v3058_v16 = vadd.f32 %v3057_v3, %v2177_v13  ;;  %v3034_v17 = vpop.f32.mrb[10].mxu1 }
 0x17d   : > { %v2237_v18 = vadd.f32 %v3056_v12, %v2684_v9  ;;  %v3052_v19 = vadd.f32 %v2161_v15, %v997_v59  ;;  %v3030_v20 = vpop.f32.mrb[2].mxu0  ;;  %v3060_v21 = vadd.f32 %v3059_v6, %v3034_v17  ;;  %v2180_v22 = vpop.f32.mrb[11].mxu1 }
 0x17e   : > { %v2233_v23 = vadd.f32 %v3051_v14, %v2684_v9  ;;  %v2235_v24 = vadd.f32 %v3058_v16, %v2684_v9  ;;  %v3053_v25 = vadd.f32 %v3030_v20, %v2910_v60  ;;  %v2164_v26 = vpop.f32.mrb[3].mxu0  ;;  %v3062_v27 = vadd.f32 %v3061_v8, %v2180_v22 }
 0x17f   : > { %v2231_v28 = vadd.f32 %v3052_v19, %v2684_v9  ;;  %v2238_v29 = vadd.f32 %v3060_v21, %v2684_v9  ;;  %v3054_v30 = vadd.f32 %v2164_v26, %v1000_v61  ;;  %v2245_v33 = vmax.f32 %v2237_v18, 0.0 }
 0x180   : > { %v2234_v31 = vadd.f32 %v3053_v25, %v2684_v9  ;;  %v2236_v32 = vadd.f32 %v3062_v27, %v2684_v9  ;;  %v2241_v36 = vmax.f32 %v2233_v23, 0.0  ;;  %v2243_v37 = vmax.f32 %v2235_v24, 0.0 }
 0x181   : > { %v2246_v34 = vmax.f32 %v2238_v29, 0.0  ;;  %v2232_v35 = vadd.f32 %v3054_v30, %v2684_v9  ;;  %v2239_v40 = vmax.f32 %v2231_v28, 0.0 }
 0x182   : > { %v2242_v38 = vmax.f32 %v2234_v31, 0.0  ;;  %v2244_v39 = vmax.f32 %v2236_v32, 0.0 }
 0x183   : > { %v2706_v41 = vpack.c.bf16 %v2246_v34, %v2245_v33  ;;  %v2240_v42 = vmax.f32 %v2232_v35, 0.0 }
 0x184   : > { %v2696_v43 = vpack.c.bf16 %v2242_v38, %v2241_v36  ;;  %v2701_v44 = vpack.c.bf16 %v2244_v39, %v2243_v37 }
 0x185   : > { %2710 = vst [vmem:[%s197_s9 + $0x18] sm:$0xff] %v2706_v41   ;;  %v2691_v45 = vpack.c.bf16 %v2240_v42, %v2239_v40 }
 0x186   : > { %2708 = vst [vmem:[%s197_s9 + $0x8] sm:$0xff] %v2696_v43   ;;  %2709 = vst [vmem:[%s197_s9 + $0x10] sm:$0xff] %v2701_v44  }
 0x187   : > { %2692 = vst [vmem:[%s197_s9] sm:$0xff] %v2691_v45  }
 0x188 PF: > { %s13_s14 = sadd.s32 1, %s3258_s14   ;;  %s3671_s12 = smov %s3254_s13 }
 0x189   : > { %p10_p6 = scmp.ge.s32.totalorder %s13_s14, 4   ;;  %s3672_s13 = smov %s3674_s15 }
 0x18b   :  { %12 = sbr.rel (!%p10_p6) target bundleno = 2 (0x2), region = 76 }

</bundles_post_ra>
